<compile_context>
chip_gen: v6e
topology: v6e:2x2x1
jax: 0.10.0
libtpu: 0.0.40
codegen_flags: <defaults>
</compile_context>

<pallas_src>
import functools
import math

import jax
import jax.numpy as jnp
import numpy as np
from jax import lax
from jax.experimental import pallas as pl
from jax.experimental.pallas import tpu as pltpu

_MASK_FILL = -1000000.0  # matches the PyTorch masked_fill value


# ------------------------------- kernel body -------------------------------

def _mha_kernel(q_ref, k_ref, v_ref, qmask_ref, kmask_ref,
                wq_ref, wk_ref, wv_ref, wo_ref,
                out_ref, *rest,
                n_heads, head_dim, causal, q_tile, k_chunk, sk, return_score):
    """One (batch element, query tile) step of fused MHA.

    q_ref     : [1, Tq, H]  bf16
    k_ref     : [1, Sk, H]  bf16   (only consumed when q-tile index == 0)
    v_ref     : [1, Sk, H]  bf16
    qmask_ref : [1, Tq, 1]  f32    (1 keep / 0 pad)
    kmask_ref : [1, 1, Sk]  f32
    wq/wk/wv  : [H, H]      bf16   (pre-transposed; wq pre-scaled by 1/sqrt(hd))
    wo        : [nH, hd, H] bf16   (head-merge folded into the projection)
    out_ref   : [1, Tq, H]  f32
    rest      : ([1, nH, Tq, Sk] score out,) + (K proj scratch, V proj scratch)
    """
    if return_score:
        score_ref, kproj_ref, vproj_ref = rest
    else:
        score_ref = None
        kproj_ref, vproj_ref = rest

    nh, hd = n_heads, head_dim
    qi = pl.program_id(1)

    # ---- once per batch element: project K/V and cache them head-major ----
    @pl.when(qi == 0)
    def _cache_kv():
        kp = jnp.dot(k_ref[0], wk_ref[...], preferred_element_type=jnp.float32)
        vp = jnp.dot(v_ref[0], wv_ref[...], preferred_element_type=jnp.float32)
        kproj_ref[...] = kp.astype(jnp.bfloat16).reshape(sk, nh, hd).transpose(1, 0, 2)
        vproj_ref[...] = vp.astype(jnp.bfloat16).reshape(sk, nh, hd).transpose(1, 0, 2)

    # ---- per query tile: Q projection (scale folded into Wq) + head split ----
    qp = jnp.dot(q_ref[0], wq_ref[...], preferred_element_type=jnp.float32)   # [Tq, H]
    qh = qp.astype(jnp.bfloat16).reshape(q_tile, nh, hd).transpose(1, 0, 2)   # [nH,Tq,hd]

    q_keep = qmask_ref[0] != 0.0                                              # [Tq, 1]

    def keep_mask(start, width):
        km = kmask_ref[0, :, pl.ds(start, width)] != 0.0                      # [1, width]
        keep = q_keep & km                                                    # [Tq, width]
        if causal:
            q_pos = lax.broadcasted_iota(jnp.int32, (q_tile, width), 0) + qi * q_tile
            k_pos = lax.broadcasted_iota(jnp.int32, (q_tile, width), 1) + start
            keep = keep & (k_pos <= q_pos)
        return keep

    def masked_scores(start, width, keep):
        kh = kproj_ref[:, pl.ds(start, width), :]                             # [nH,w,hd]
        s = jnp.einsum("nqd,nkd->nqk", qh, kh,
                       preferred_element_type=jnp.float32)                    # [nH,Tq,w]
        return jnp.where(keep[None], s, _MASK_FILL)

    n_chunks = sk // k_chunk
    row_scale = None

    if return_score or n_chunks <= 1:
        # Single shot over the whole key axis (needed to materialize the score).
        keep = keep_mask(0, sk)
        s = masked_scores(0, sk, keep)
        m = jnp.max(s, axis=-1, keepdims=True)
        e = jnp.exp(s - m)
        l = jnp.sum(e, axis=-1, keepdims=True)
        p = e * pl.reciprocal(l, approx=True)
        p = jnp.where(keep[None], p, 0.0)                                     # exact zeros
        if return_score:
            score_ref[0] = p.astype(score_ref.dtype)
        out_h = jnp.einsum("nqk,nkd->nqd", p.astype(jnp.bfloat16), vproj_ref[...],
                           preferred_element_type=jnp.float32)                # [nH,Tq,hd]
    else:
        # Flash-style online softmax over key chunks; no [nH,Tq,Sk] tensor.
        def body(c, carry):
            m, l, acc, rowv = carry
            start = pl.multiple_of(c * k_chunk, k_chunk)
            keep = keep_mask(start, k_chunk)
            s = masked_scores(start, k_chunk, keep)
            m_new = jnp.maximum(m, jnp.max(s, axis=-1, keepdims=True))
            alpha = jnp.exp(m - m_new)
            p = jnp.exp(s - m_new)
            l_new = alpha * l + jnp.sum(p, axis=-1, keepdims=True)
            vh = vproj_ref[:, pl.ds(start, k_chunk), :]
            acc_new = alpha * acc + jnp.einsum(
                "nqk,nkd->nqd", p.astype(jnp.bfloat16), vh,
                preferred_element_type=jnp.float32)
            rowv_new = jnp.maximum(
                rowv, jnp.max(keep.astype(jnp.float32), axis=-1, keepdims=True))
            return m_new, l_new, acc_new, rowv_new

        init = (jnp.full((nh, q_tile, 1), -1e30, jnp.float32),
                jnp.zeros((nh, q_tile, 1), jnp.float32),
                jnp.zeros((nh, q_tile, hd), jnp.float32),
                jnp.zeros((q_tile, 1), jnp.float32))
        m, l, acc, rowv = lax.fori_loop(0, n_chunks, body, init)
        out_h = acc * pl.reciprocal(l, approx=True)                           # [nH,Tq,hd]
        row_scale = rowv                                                      # [Tq, 1]

    # ---- head merge fused into the output projection: per-head GEMM + reduce ----
    proj = jnp.einsum("nqd,ndf->nqf", out_h.astype(jnp.bfloat16), wo_ref[...],
                      preferred_element_type=jnp.float32)                     # [nH,Tq,H]
    out = jnp.sum(proj, axis=0)                                               # [Tq, H]
    if row_scale is not None:
        out = out * row_scale   # zero rows with no visible valid key (incl. q pads)
    out_ref[0] = out.astype(out_ref.dtype)


# --------------------------- tiling / VMEM budget ---------------------------

def _vmem_capacity_bytes():
    try:
        info = pltpu.get_tpu_info()
        cap = getattr(info, "vmem_capacity_bytes", None)
        if cap:
            return int(cap)
    except Exception:
        pass
    return 64 * 1024 * 1024  # conservative (v7x-sized) fallback


def _estimate_vmem(tq, tk, sk, h, n_heads, hd, return_score, score_bytes):
    """Rough upper bound on VMEM bytes for one grid step (double buffers included)."""
    b2, f4 = 2, 4
    hd_pad = hd if hd % 128 == 0 else max(hd, 128)      # lane padding of head-major tiles
    est = 2 * 4 * h * h * b2                            # 4 weights, double buffered
    est += 2 * tq * h * b2 + 2 * 2 * sk * h * b2        # q + k/v input blocks
    est += 2 * n_heads * sk * hd_pad * b2               # cached head-major K/V scratch
    est += 2 * tq * h * f4                              # output block
    est += sk * h * f4 + n_heads * sk * hd_pad * b2     # per-batch K/V projection temps
    est += tq * h * f4 + n_heads * tq * hd_pad * b2     # Q projection temps
    if return_score:
        est += 2 * n_heads * tq * sk * score_bytes      # score output block
        est += n_heads * tq * sk * (3 * f4 + b2)        # s / e / p intermediates
    else:
        est += n_heads * tq * tk * (3 * f4 + b2)        # per-chunk s / p
        est += 2 * n_heads * tq * hd_pad * f4           # online-softmax accumulator
    est += n_heads * tq * h * f4 + tq * h * f4          # per-head out-proj + reduced out
    return est


def _choose_tiles(sq, sk, h, n_heads, hd, return_score, score_bytes, vmem_cap):
    budget = int(vmem_cap * 0.65)
    if return_score:
        tk_opts = [sk]
    else:
        tk_opts = [sk] + [t for t in (512, 256, 128) if t < sk and sk % t == 0]

    cand = {sq} if sq <= 1024 else set()
    cand |= {t for t in (1024, 512, 256, 128, 64, 32, 16, 8) if t <= sq}
    cand = [t for t in cand if t == sq or t % 8 == 0]
    ordered = (sorted([t for t in cand if sq % t == 0], reverse=True)
               + sorted([t for t in cand if sq % t != 0], reverse=True))

    for tq in ordered:
        for tk in tk_opts:
            if _estimate_vmem(tq, tk, sk, h, n_heads, hd,
                              return_score, score_bytes) <= budget:
                return tq, tk
    return ordered[-1], tk_opts[-1]


# --------------------------------- wrapper ----------------------------------

def multi_head_attention(q, attention_mask, k=None, k_attention_mask=None, v=None, *,
                         params, n_heads, causal=False, return_score=True,
                         score_dtype=jnp.float32, q_tile=None, k_chunk=None):
    """Pallas-backed equivalent of MultiHeadAttention.forward.

    Returns (output [B, Sq, H] f32,
             attention_score [B, n_heads, Sq, Sk] (score_dtype) or None).
    """
    if k is None:
        k = q
    if v is None:
        v = q
    if k_attention_mask is None:
        k_attention_mask = attention_mask

    B, Sq, H = q.shape
    Sk = k.shape[1]
    assert H % n_heads == 0, "hidden must be divisible by n_heads"
    hd = H // n_heads

    vmem_cap = _vmem_capacity_bytes()
    score_bytes = np.dtype(score_dtype).itemsize if return_score else 0
    Tq, Tk = _choose_tiles(Sq, Sk, H, n_heads, hd, return_score, score_bytes, vmem_cap)
    if q_tile is not None:
        assert q_tile == Sq or (q_tile % 8 == 0 and q_tile <= Sq)
        Tq = q_tile
    if k_chunk is not None:
        assert k_chunk == Sk or (Sk % k_chunk == 0 and k_chunk % 128 == 0)
        Tk = k_chunk
    n_q_tiles = pl.cdiv(Sq, Tq)

    est = _estimate_vmem(Tq, Tk, Sk, H, n_heads, hd, return_score, score_bytes)
    vmem_limit = int(min(vmem_cap * 0.9, max(est * 1.25, 32 * 1024 * 1024)))

    # bf16 at the MXU/DMA boundary; f32 accumulation inside the kernel.
    scale = 1.0 / math.sqrt(hd)
    q_b = q.astype(jnp.bfloat16)
    k_b = k.astype(jnp.bfloat16)
    v_b = v.astype(jnp.bfloat16)
    # nn.Linear computes x @ W.T ; pass W.T (Wq pre-scaled, Wo split per head).
    wq_t = (params["wq"].T * scale).astype(jnp.bfloat16)
    wk_t = params["wk"].T.astype(jnp.bfloat16)
    wv_t = params["wv"].T.astype(jnp.bfloat16)
    wo_3 = params["wo"].T.reshape(n_heads, hd, H).astype(jnp.bfloat16)

    # Tiny per-axis keep vectors; the dense mask is rebuilt in-kernel (iota + cmp).
    q_keep = (attention_mask != 0).astype(jnp.float32).reshape(B, Sq, 1)
    k_keep = (k_attention_mask != 0).astype(jnp.float32).reshape(B, 1, Sk)

    kernel = functools.partial(
        _mha_kernel, n_heads=n_heads, head_dim=hd, causal=causal,
        q_tile=Tq, k_chunk=Tk, sk=Sk, return_score=return_score)

    out_shapes = [jax.ShapeDtypeStruct((B, Sq, H), jnp.float32)]
    out_specs = [pl.BlockSpec((1, Tq, H), lambda b, qi: (b, qi, 0))]
    if return_score:
        out_shapes.append(jax.ShapeDtypeStruct((B, n_heads, Sq, Sk), score_dtype))
        out_specs.append(
            pl.BlockSpec((1, n_heads, Tq, Sk), lambda b, qi: (b, 0, qi, 0)))

    results = pl.pallas_call(
        kernel,
        out_shape=tuple(out_shapes),
        grid=(B, n_q_tiles),
        in_specs=[
            pl.BlockSpec((1, Tq, H), lambda b, qi: (b, qi, 0)),     # q
            pl.BlockSpec((1, Sk, H), lambda b, qi: (b, 0, 0)),      # k (used at qi==0)
            pl.BlockSpec((1, Sk, H), lambda b, qi: (b, 0, 0)),      # v (used at qi==0)
            pl.BlockSpec((1, Tq, 1), lambda b, qi: (b, qi, 0)),     # q keep mask
            pl.BlockSpec((1, 1, Sk), lambda b, qi: (b, 0, 0)),      # k keep mask
            pl.BlockSpec((H, H), lambda b, qi: (0, 0)),             # wq^T (scaled)
            pl.BlockSpec((H, H), lambda b, qi: (0, 0)),             # wk^T
            pl.BlockSpec((H, H), lambda b, qi: (0, 0)),             # wv^T
            pl.BlockSpec((n_heads, hd, H), lambda b, qi: (0, 0, 0)),# wo per head
        ],
        out_specs=tuple(out_specs),
        scratch_shapes=[pltpu.VMEM((n_heads, Sk, hd), jnp.bfloat16),   # cached K proj
                        pltpu.VMEM((n_heads, Sk, hd), jnp.bfloat16)],  # cached V proj
        compiler_params=pltpu.CompilerParams(
            dimension_semantics=("parallel", "arbitrary"),
            vmem_limit_bytes=vmem_limit),
    )(q_b, k_b, v_b, q_keep, k_keep, wq_t, wk_t, wv_t, wo_3)

    out = results[0]
    score = results[1] if return_score else None
    return out, score


# ----------------------------- pure-JAX reference -----------------------------

def build_attention_mask(q_mask, k_mask, causal):
    """Replicates MultiHeadAttention.__get_attention_mask (per-batch, no head dim)."""
    if k_mask is None:
        k_mask = q_mask
    bsz, sq = q_mask.shape
    sk = k_mask.shape[1]
    m = jnp.ones((bsz, sq, sk), dtype=bool)
    if causal:
        tri = jnp.tril(jnp.ones((sq, sk), dtype=bool))
        m = m & tri[None]
    m = m & (q_mask != 0)[:, :, None]
    m = m & (k_mask != 0)[:, None, :]
    return m.astype(jnp.float32)


def reference_mha(q, attention_mask, params, n_heads, causal,
                  k=None, k_attention_mask=None, v=None):
    """Pure-JAX f32 reference mirroring the PyTorch forward."""
    if k is None:
        k = q
    if v is None:
        v = q
    B, Sq, H = q.shape
    Sk = k.shape[1]
    hd = H // n_heads
    mask = build_attention_mask(attention_mask, k_attention_mask, causal)
    mask4 = jnp.broadcast_to(mask[:, None], (B, n_heads, Sq, Sk))

    def proj(x, w):
        return x @ w.T

    def split(t, S):
        return t.reshape(B, S, n_heads, hd).transpose(0, 2, 1, 3)

    qh = split(proj(q, params["wq"]), Sq)
    kh = split(proj(k, params["wk"]), Sk)
    vh = split(proj(v, params["wv"]), Sk)

    score = jnp.einsum("bhqd,bhkd->bhqk", qh, kh) / math.sqrt(hd)
    score = jnp.where(mask4 == 0, _MASK_FILL, score)
    score = jax.nn.softmax(score, axis=-1)
    score = jnp.where(mask4 == 0, 0.0, score)
    out_h = jnp.einsum("bhqk,bhkd->bhqd", score, vh)
    out = out_h.transpose(0, 2, 1, 3).reshape(B, Sq, H)
    out = proj(out, params["wo"])
    return out, score


# ----------------------------------- demo -----------------------------------

if __name__ == "__main__":
    key = jax.random.PRNGKey(0)
    kx, kwq, kwk, kwv, kwo, kx2, kwq2, kwk2, kwv2, kwo2 = jax.random.split(key, 10)

    # ---- test 1: small self-attention with right-padding + causal mask ----
    B, S, H, NH = 2, 8, 32, 4
    x = jax.random.normal(kx, (B, S, H), dtype=jnp.float32)
    bound = 1.0 / math.sqrt(H)
    params = {name: jax.random.uniform(kk, (H, H), jnp.float32, -bound, bound)
              for name, kk in (("wq", kwq), ("wk", kwk), ("wv", kwv), ("wo", kwo))}
    attn_mask = jnp.array([[1, 1, 1, 1, 1, 1, 1, 1],
                           [1, 1, 1, 1, 1, 0, 0, 0]], dtype=jnp.int32)

    out, score = multi_head_attention(x, attn_mask, params=params, n_heads=NH,
                                      causal=True, return_score=True)
    jax.block_until_ready((out, score))
    ref_out, ref_score = reference_mha(x, attn_mask, params, NH, True)
    np.testing.assert_allclose(np.asarray(out), np.asarray(ref_out), rtol=3e-2, atol=3e-2)
    np.testing.assert_allclose(np.asarray(score), np.asarray(ref_score), rtol=3e-2, atol=3e-2)

    out_ns, no_score = multi_head_attention(x, attn_mask, params=params, n_heads=NH,
                                            causal=True, return_score=False)
    out_ns = jax.block_until_ready(out_ns)
    assert no_score is None
    np.testing.assert_allclose(np.asarray(out_ns), np.asarray(ref_out), rtol=3e-2, atol=3e-2)
    assert out.shape == (B, S, H) and score.shape == (B, NH, S, S)

    # ---- test 2: larger case exercising q-tiling, cached K/V projections,
    #      the multi-chunk online softmax and the "causal row sees only padded
    #      keys" corner (left-padded key mask on batch 1) ----
    B2, S2, H2, NH2 = 2, 256, 128, 4
    x2 = jax.random.normal(kx2, (B2, S2, H2), dtype=jnp.float32)
    bound2 = 1.0 / math.sqrt(H2)
    params2 = {name: jax.random.uniform(kk, (H2, H2), jnp.float32, -bound2, bound2)
               for name, kk in (("wq", kwq2), ("wk", kwk2), ("wv", kwv2), ("wo", kwo2))}
    q_mask2 = jnp.ones((B2, S2), dtype=jnp.int32)
    k_mask2 = jnp.ones((B2, S2), dtype=jnp.int32).at[1, :48].set(0)

    ref_out2, ref_score2 = reference_mha(x2, q_mask2, params2, NH2, True,
                                         k=x2, k_attention_mask=k_mask2, v=x2)

    out_f, _ = multi_head_attention(x2, q_mask2, k=x2, k_attention_mask=k_mask2, v=x2,
                                    params=params2, n_heads=NH2, causal=True,
                                    return_score=False, q_tile=128, k_chunk=128)
    out_f = jax.block_until_ready(out_f)
    np.testing.assert_allclose(np.asarray(out_f), np.asarray(ref_out2), rtol=5e-2, atol=5e-2)

    out_s, score_s = multi_head_attention(x2, q_mask2, k=x2, k_attention_mask=k_mask2, v=x2,
                                          params=params2, n_heads=NH2, causal=True,
                                          return_score=True, q_tile=128)
    jax.block_until_ready((out_s, score_s))
    np.testing.assert_allclose(np.asarray(out_s), np.asarray(ref_out2), rtol=5e-2, atol=5e-2)
    np.testing.assert_allclose(np.asarray(score_s), np.asarray(ref_score2), rtol=5e-2, atol=5e-2)

    print("KERNEL_OK")
</pallas_src>

<mosaic_0001>
module attributes {stable_mosaic.version = 11 : i64} {
  func.func @_mha_kernel(%arg0: i32, %arg1: i32, %arg2: memref<1x8x32xbf16, #tpu.memory_space<vmem>>, %arg3: memref<1x8x32xbf16, #tpu.memory_space<vmem>>, %arg4: memref<1x8x32xbf16, #tpu.memory_space<vmem>>, %arg5: memref<1x8x1xf32, #tpu.memory_space<vmem>>, %arg6: memref<1x1x8xf32, #tpu.memory_space<vmem>>, %arg7: memref<32x32xbf16, #tpu.memory_space<vmem>>, %arg8: memref<32x32xbf16, #tpu.memory_space<vmem>>, %arg9: memref<32x32xbf16, #tpu.memory_space<vmem>>, %arg10: memref<4x8x32xbf16, #tpu.memory_space<vmem>>, %arg11: memref<1x8x32xf32, #tpu.memory_space<vmem>>, %arg12: memref<1x4x8x8xf32, #tpu.memory_space<vmem>>, %arg13: memref<4x8x8xbf16, #tpu.memory_space<vmem>>, %arg14: memref<4x8x8xbf16, #tpu.memory_space<vmem>>) attributes {dimension_semantics = [#tpu.dimension_semantics<parallel>, #tpu.dimension_semantics<arbitrary>], iteration_bounds = array<i64: 2, 1>, scalar_prefetch = 0 : i64, scratch_operands = 2 : i64, tpu.core_type = #tpu.core_type<tc>, window_params = [{transform_indices = @transform_0, window_bounds = array<i64: 1, 8, 32>}, {transform_indices = @transform_1, window_bounds = array<i64: 1, 8, 32>}, {transform_indices = @transform_2, window_bounds = array<i64: 1, 8, 32>}, {transform_indices = @transform_3, window_bounds = array<i64: 1, 8, 1>}, {transform_indices = @transform_4, window_bounds = array<i64: 1, 1, 8>}, {pipeline_mode = #tpu.pipeline_mode<synchronous>, transform_indices = @transform_5, window_bounds = array<i64: 32, 32>}, {pipeline_mode = #tpu.pipeline_mode<synchronous>, transform_indices = @transform_6, window_bounds = array<i64: 32, 32>}, {pipeline_mode = #tpu.pipeline_mode<synchronous>, transform_indices = @transform_7, window_bounds = array<i64: 32, 32>}, {pipeline_mode = #tpu.pipeline_mode<synchronous>, transform_indices = @transform_8, window_bounds = array<i64: 4, 8, 32>}, {transform_indices = @transform_9, window_bounds = array<i64: 1, 8, 32>}, {transform_indices = @transform_10, window_bounds = array<i64: 1, 4, 8, 8>}]} {
    %c0_i32 = arith.constant 0 : i32
    %0 = arith.cmpi eq, %arg1, %c0_i32 : i32
    %1 = arith.extui %0 : i1 to i32
    %c0_i32_0 = arith.constant 0 : i32
    %2 = arith.cmpi ne, %1, %c0_i32_0 : i32
    scf.if %2 {
      %c0_38 = arith.constant 0 : index
      %c0_39 = arith.constant 0 : index
      %c0_40 = arith.constant 0 : index
      %65 = vector.load %arg3[%c0_38, %c0_39, %c0_40] : memref<1x8x32xbf16, #tpu.memory_space<vmem>>, vector<1x8x32xbf16>
      %66 = vector.shape_cast %65 : vector<1x8x32xbf16> to vector<8x32xbf16>
      %c0_41 = arith.constant 0 : index
      %c0_42 = arith.constant 0 : index
      %67 = vector.load %arg8[%c0_41, %c0_42] : memref<32x32xbf16, #tpu.memory_space<vmem>>, vector<32x32xbf16>
      %cst_43 = arith.constant dense<0.000000e+00> : vector<8x32xf32>
      %68 = tpu.matmul %66, %67, %cst_43 {dimension_numbers = #tpu.dot_dimension_numbers<[1], [0], [0], [1], [0, 0, 1, 1], [], []>} : vector<8x32xbf16>, vector<32x32xbf16>, vector<8x32xf32> -> vector<8x32xf32>
      %c0_44 = arith.constant 0 : index
      %c0_45 = arith.constant 0 : index
      %c0_46 = arith.constant 0 : index
      %69 = vector.load %arg4[%c0_44, %c0_45, %c0_46] : memref<1x8x32xbf16, #tpu.memory_space<vmem>>, vector<1x8x32xbf16>
      %70 = vector.shape_cast %69 : vector<1x8x32xbf16> to vector<8x32xbf16>
      %c0_47 = arith.constant 0 : index
      %c0_48 = arith.constant 0 : index
      %71 = vector.load %arg9[%c0_47, %c0_48] : memref<32x32xbf16, #tpu.memory_space<vmem>>, vector<32x32xbf16>
      %cst_49 = arith.constant dense<0.000000e+00> : vector<8x32xf32>
      %72 = tpu.matmul %70, %71, %cst_49 {dimension_numbers = #tpu.dot_dimension_numbers<[1], [0], [0], [1], [0, 0, 1, 1], [], []>} : vector<8x32xbf16>, vector<32x32xbf16>, vector<8x32xf32> -> vector<8x32xf32>
      %73 = arith.truncf %68 : vector<8x32xf32> to vector<8x32xbf16>
      %74 = vector.shape_cast %73 : vector<8x32xbf16> to vector<8x4x8xbf16>
      %75 = tpu.transpose %74, [1, 0, 2] : vector<8x4x8xbf16> -> vector<4x8x8xbf16>
      %c0_50 = arith.constant 0 : index
      %c0_51 = arith.constant 0 : index
      %c0_52 = arith.constant 0 : index
      %76 = vector.load %arg13[%c0_50, %c0_51, %c0_52] : memref<4x8x8xbf16, #tpu.memory_space<vmem>>, vector<4x8x8xbf16>
      tpu.vector_store %arg13[%c0_50, %c0_51, %c0_52], %75 {strides = array<i32>} : memref<4x8x8xbf16, #tpu.memory_space<vmem>>, vector<4x8x8xbf16>,
      %77 = arith.truncf %72 : vector<8x32xf32> to vector<8x32xbf16>
      %78 = vector.shape_cast %77 : vector<8x32xbf16> to vector<8x4x8xbf16>
      %79 = tpu.transpose %78, [1, 0, 2] : vector<8x4x8xbf16> -> vector<4x8x8xbf16>
      %c0_53 = arith.constant 0 : index
      %c0_54 = arith.constant 0 : index
      %c0_55 = arith.constant 0 : index
      %80 = vector.load %arg14[%c0_53, %c0_54, %c0_55] : memref<4x8x8xbf16, #tpu.memory_space<vmem>>, vector<4x8x8xbf16>
      tpu.vector_store %arg14[%c0_53, %c0_54, %c0_55], %79 {strides = array<i32>} : memref<4x8x8xbf16, #tpu.memory_space<vmem>>, vector<4x8x8xbf16>,
    } else {
    }
    %c0 = arith.constant 0 : index
    %c0_1 = arith.constant 0 : index
    %c0_2 = arith.constant 0 : index
    %3 = vector.load %arg2[%c0, %c0_1, %c0_2] : memref<1x8x32xbf16, #tpu.memory_space<vmem>>, vector<1x8x32xbf16>
    %4 = vector.shape_cast %3 : vector<1x8x32xbf16> to vector<8x32xbf16>
    %c0_3 = arith.constant 0 : index
    %c0_4 = arith.constant 0 : index
    %5 = vector.load %arg7[%c0_3, %c0_4] : memref<32x32xbf16, #tpu.memory_space<vmem>>, vector<32x32xbf16>
    %cst = arith.constant dense<0.000000e+00> : vector<8x32xf32>
    %6 = tpu.matmul %4, %5, %cst {dimension_numbers = #tpu.dot_dimension_numbers<[1], [0], [0], [1], [0, 0, 1, 1], [], []>} : vector<8x32xbf16>, vector<32x32xbf16>, vector<8x32xf32> -> vector<8x32xf32>
    %7 = arith.truncf %6 : vector<8x32xf32> to vector<8x32xbf16>
    %8 = vector.shape_cast %7 : vector<8x32xbf16> to vector<8x4x8xbf16>
    %9 = tpu.transpose %8, [1, 0, 2] : vector<8x4x8xbf16> -> vector<4x8x8xbf16>
    %c0_5 = arith.constant 0 : index
    %c0_6 = arith.constant 0 : index
    %c0_7 = arith.constant 0 : index
    %10 = vector.load %arg5[%c0_5, %c0_6, %c0_7] : memref<1x8x1xf32, #tpu.memory_space<vmem>>, vector<1x8x1xf32>
    %11 = vector.shape_cast %10 : vector<1x8x1xf32> to vector<8x1xf32>
    %cst_8 = arith.constant 0.000000e+00 : f32
    %12 = vector.broadcast %cst_8 : f32 to vector<8x1xf32>
    %13 = arith.cmpf one, %11, %12 : vector<8x1xf32>
    %c0_9 = arith.constant 0 : index
    %c0_10 = arith.constant 0 : index
    %c0_11 = arith.constant 0 : index
    %14 = vector.load %arg6[%c0_9, %c0_10, %c0_11] : memref<1x1x8xf32, #tpu.memory_space<vmem>>, vector<1x1x8xf32>
    %15 = vector.shape_cast %14 : vector<1x1x8xf32> to vector<1x8xf32>
    %cst_12 = arith.constant 0.000000e+00 : f32
    %16 = vector.broadcast %cst_12 : f32 to vector<1x8xf32>
    %17 = arith.cmpf one, %15, %16 : vector<1x8xf32>
    %18 = vector.broadcast %13 : vector<8x1xi1> to vector<8x8xi1>
    %19 = vector.broadcast %17 : vector<1x8xi1> to vector<8x8xi1>
    %20 = arith.andi %18, %19 : vector<8x8xi1>
    %21 = tpu.iota {dimensions = array<i32: 0>} : vector<8x8xi32>
    %c8_i32 = arith.constant 8 : i32
    %22 = arith.muli %arg1, %c8_i32 : i32
    %23 = vector.broadcast %22 : i32 to vector<8x8xi32>
    %24 = arith.addi %21, %23 : vector<8x8xi32>
    %25 = tpu.iota {dimensions = array<i32: 1>} : vector<8x8xi32>
    %c0_i32_13 = arith.constant 0 : i32
    %26 = vector.broadcast %c0_i32_13 : i32 to vector<8x8xi32>
    %27 = arith.addi %25, %26 : vector<8x8xi32>
    %28 = arith.cmpi sle, %27, %24 : vector<8x8xi32>
    %29 = arith.andi %20, %28 : vector<8x8xi1>
    %c0_14 = arith.constant 0 : index
    %c0_15 = arith.constant 0 : index
    %c0_16 = arith.constant 0 : index
    %30 = vector.load %arg13[%c0_14, %c0_15, %c0_16] : memref<4x8x8xbf16, #tpu.memory_space<vmem>>, vector<4x8x8xbf16>
    "tpu.trace_start"() <{level = 10 : i32, message = "nqd,nkd->nqk"}> : () -> ()
    %cst_17 = arith.constant dense<0.000000e+00> : vector<4x8x8xf32>
    %31 = tpu.matmul %9, %30, %cst_17 {dimension_numbers = #tpu.dot_dimension_numbers<[2], [2], [1], [1], [0, 0, 0, 1, 1, 1], [0], [0]>} : vector<4x8x8xbf16>, vector<4x8x8xbf16>, vector<4x8x8xf32> -> vector<4x8x8xf32>
    "tpu.trace_stop"() : () -> ()
    %32 = vector.shape_cast %29 : vector<8x8xi1> to vector<1x8x8xi1>
    %cst_18 = arith.constant -1.000000e+06 : f32
    %33 = vector.shape_cast %32 : vector<1x8x8xi1> to vector<1x8x8xi1>
    %34 = vector.broadcast %33 : vector<1x8x8xi1> to vector<4x8x8xi1>
    %35 = vector.broadcast %cst_18 : f32 to vector<4x8x8xf32>
    %36 = arith.select %34, %31, %35 : vector<4x8x8xi1>, vector<4x8x8xf32>
    %cst_19 = arith.constant dense<0xFF800000> : vector<4x8xf32>
    %37 = vector.multi_reduction <maximumf>, %36, %cst_19 [2] : vector<4x8x8xf32> to vector<4x8xf32>
    %38 = vector.shape_cast %37 : vector<4x8xf32> to vector<4x8x1xf32>
    %39 = vector.broadcast %38 : vector<4x8x1xf32> to vector<4x8x8xf32>
    %40 = arith.subf %36, %39 : vector<4x8x8xf32>
    %41 = math.exp %40 : vector<4x8x8xf32>
    %cst_20 = arith.constant dense<0.000000e+00> : vector<4x8xf32>
    %42 = vector.multi_reduction <add>, %41, %cst_20 [2] : vector<4x8x8xf32> to vector<4x8xf32>
    %43 = vector.shape_cast %42 : vector<4x8xf32> to vector<4x8x1xf32>
    %44 = tpu.reciprocal %43 {approx = true} : vector<4x8x1xf32> -> vector<4x8x1xf32>
    %45 = vector.broadcast %44 : vector<4x8x1xf32> to vector<4x8x8xf32>
    %46 = arith.mulf %41, %45 : vector<4x8x8xf32>
    %47 = vector.shape_cast %29 : vector<8x8xi1> to vector<1x8x8xi1>
    %cst_21 = arith.constant 0.000000e+00 : f32
    %48 = vector.shape_cast %47 : vector<1x8x8xi1> to vector<1x8x8xi1>
    %49 = vector.broadcast %48 : vector<1x8x8xi1> to vector<4x8x8xi1>
    %50 = vector.broadcast %cst_21 : f32 to vector<4x8x8xf32>
    %51 = arith.select %49, %46, %50 : vector<4x8x8xi1>, vector<4x8x8xf32>
    %c0_22 = arith.constant 0 : index
    %c0_23 = arith.constant 0 : index
    %c0_24 = arith.constant 0 : index
    %c0_25 = arith.constant 0 : index
    %52 = vector.load %arg12[%c0_22, %c0_23, %c0_24, %c0_25] : memref<1x4x8x8xf32, #tpu.memory_space<vmem>>, vector<1x4x8x8xf32>
    %53 = vector.shape_cast %52 : vector<1x4x8x8xf32> to vector<4x8x8xf32>
    %54 = vector.shape_cast %51 : vector<4x8x8xf32> to vector<1x4x8x8xf32>
    tpu.vector_store %arg12[%c0_22, %c0_23, %c0_24, %c0_25], %54 {strides = array<i32>} : memref<1x4x8x8xf32, #tpu.memory_space<vmem>>, vector<1x4x8x8xf32>,
    %55 = arith.truncf %51 : vector<4x8x8xf32> to vector<4x8x8xbf16>
    %c0_26 = arith.constant 0 : index
    %c0_27 = arith.constant 0 : index
    %c0_28 = arith.constant 0 : index
    %56 = vector.load %arg14[%c0_26, %c0_27, %c0_28] : memref<4x8x8xbf16, #tpu.memory_space<vmem>>, vector<4x8x8xbf16>
    "tpu.trace_start"() <{level = 10 : i32, message = "nqk,nkd->nqd"}> : () -> ()
    %cst_29 = arith.constant dense<0.000000e+00> : vector<4x8x8xf32>
    %57 = tpu.matmul %55, %56, %cst_29 {dimension_numbers = #tpu.dot_dimension_numbers<[2], [1], [1], [2], [0, 0, 0, 1, 1, 2], [0], [0]>} : vector<4x8x8xbf16>, vector<4x8x8xbf16>, vector<4x8x8xf32> -> vector<4x8x8xf32>
    "tpu.trace_stop"() : () -> ()
    %58 = arith.truncf %57 : vector<4x8x8xf32> to vector<4x8x8xbf16>
    %c0_30 = arith.constant 0 : index
    %c0_31 = arith.constant 0 : index
    %c0_32 = arith.constant 0 : index
    %59 = vector.load %arg10[%c0_30, %c0_31, %c0_32] : memref<4x8x32xbf16, #tpu.memory_space<vmem>>, vector<4x8x32xbf16>
    "tpu.trace_start"() <{level = 10 : i32, message = "nqd,ndf->nqf"}> : () -> ()
    %cst_33 = arith.constant dense<0.000000e+00> : vector<4x8x32xf32>
    %60 = tpu.matmul %58, %59, %cst_33 {dimension_numbers = #tpu.dot_dimension_numbers<[2], [1], [1], [2], [0, 0, 0, 1, 1, 2], [0], [0]>} : vector<4x8x8xbf16>, vector<4x8x32xbf16>, vector<4x8x32xf32> -> vector<4x8x32xf32>
    "tpu.trace_stop"() : () -> ()
    %cst_34 = arith.constant dense<0.000000e+00> : vector<8x32xf32>
    %61 = vector.multi_reduction <add>, %60, %cst_34 [0] : vector<4x8x32xf32> to vector<8x32xf32>
    %c0_35 = arith.constant 0 : index
    %c0_36 = arith.constant 0 : index
    %c0_37 = arith.constant 0 : index
    %62 = vector.load %arg11[%c0_35, %c0_36, %c0_37] : memref<1x8x32xf32, #tpu.memory_space<vmem>>, vector<1x8x32xf32>
    %63 = vector.shape_cast %62 : vector<1x8x32xf32> to vector<8x32xf32>
    %64 = vector.shape_cast %61 : vector<8x32xf32> to vector<1x8x32xf32>
    tpu.vector_store %arg11[%c0_35, %c0_36, %c0_37], %64 {strides = array<i32>} : memref<1x8x32xf32, #tpu.memory_space<vmem>>, vector<1x8x32xf32>,
    return
  }
  func.func @transform_0(%arg0: i32, %arg1: i32) -> (i32, i32, i32) {
    %c0_i32 = arith.constant 0 : i32
    %c0_i32_0 = arith.constant 0 : i32
    return %arg0, %arg1, %c0_i32 : i32, i32, i32
  }
  func.func @transform_1(%arg0: i32, %arg1: i32) -> (i32, i32, i32) {
    %c0_i32 = arith.constant 0 : i32
    %c0_i32_0 = arith.constant 0 : i32
    %c0_i32_1 = arith.constant 0 : i32
    return %arg0, %c0_i32, %c0_i32_0 : i32, i32, i32
  }
  func.func @transform_2(%arg0: i32, %arg1: i32) -> (i32, i32, i32) {
    %c0_i32 = arith.constant 0 : i32
    %c0_i32_0 = arith.constant 0 : i32
    %c0_i32_1 = arith.constant 0 : i32
    return %arg0, %c0_i32, %c0_i32_0 : i32, i32, i32
  }
  func.func @transform_3(%arg0: i32, %arg1: i32) -> (i32, i32, i32) {
    %c0_i32 = arith.constant 0 : i32
    %c0_i32_0 = arith.constant 0 : i32
    return %arg0, %arg1, %c0_i32 : i32, i32, i32
  }
  func.func @transform_4(%arg0: i32, %arg1: i32) -> (i32, i32, i32) {
    %c0_i32 = arith.constant 0 : i32
    %c0_i32_0 = arith.constant 0 : i32
    %c0_i32_1 = arith.constant 0 : i32
    return %arg0, %c0_i32, %c0_i32_0 : i32, i32, i32
  }
  func.func @transform_5(%arg0: i32, %arg1: i32) -> (i32, i32) {
    %c0_i32 = arith.constant 0 : i32
    %c0_i32_0 = arith.constant 0 : i32
    %c0_i32_1 = arith.constant 0 : i32
    return %c0_i32, %c0_i32_0 : i32, i32
  }
  func.func @transform_6(%arg0: i32, %arg1: i32) -> (i32, i32) {
    %c0_i32 = arith.constant 0 : i32
    %c0_i32_0 = arith.constant 0 : i32
    %c0_i32_1 = arith.constant 0 : i32
    return %c0_i32, %c0_i32_0 : i32, i32
  }
  func.func @transform_7(%arg0: i32, %arg1: i32) -> (i32, i32) {
    %c0_i32 = arith.constant 0 : i32
    %c0_i32_0 = arith.constant 0 : i32
    %c0_i32_1 = arith.constant 0 : i32
    return %c0_i32, %c0_i32_0 : i32, i32
  }
  func.func @transform_8(%arg0: i32, %arg1: i32) -> (i32, i32, i32) {
    %c0_i32 = arith.constant 0 : i32
    %c0_i32_0 = arith.constant 0 : i32
    %c0_i32_1 = arith.constant 0 : i32
    %c0_i32_2 = arith.constant 0 : i32
    return %c0_i32, %c0_i32_0, %c0_i32_1 : i32, i32, i32
  }
  func.func @transform_9(%arg0: i32, %arg1: i32) -> (i32, i32, i32) {
    %c0_i32 = arith.constant 0 : i32
    %c0_i32_0 = arith.constant 0 : i32
    return %arg0, %arg1, %c0_i32 : i32, i32, i32
  }
  func.func @transform_10(%arg0: i32, %arg1: i32) -> (i32, i32, i32, i32) {
    %c0_i32 = arith.constant 0 : i32
    %c0_i32_0 = arith.constant 0 : i32
    %c0_i32_1 = arith.constant 0 : i32
    return %arg0, %c0_i32, %arg1, %c0_i32_0 : i32, i32, i32, i32
  }
}

</mosaic_0001>

<bundles_post_ra>
// kernel: tpu_custom_call.1
= control target key start
LH: loop header
LB: loop body
LE: loop exit
PB: predicated region body
PF: predicated region fallthrough
CT: control target
= control target key end

     0   :  { %s3422_s0 = inlined_call_operand.hbm [shape: bf16[2,8,32], index: 0, kind: input, shape index: {}]   ;;  %s3423_s1 = inlined_call_operand.hbm [shape: bf16[2,8,32], index: 1, kind: input, shape index: {}]   ;;  %s3424_s2 = inlined_call_operand.hbm [shape: bf16[2,8,32], index: 2, kind: input, shape index: {}]   ;;  %s3425_s3 = inlined_call_operand.vmem [shape: f32[2,8,1], index: 3, kind: input, shape index: {}]   ;;  %s3426_s4 = inlined_call_operand.hbm [shape: f32[2,1,8], index: 4, kind: input, shape index: {}]   ;;  %s3427_s5 = inlined_call_operand.vmem [shape: bf16[32,32], index: 5, kind: input, shape index: {}]   ;;  %s3428_s6 = inlined_call_operand.hbm [shape: bf16[32,32], index: 6, kind: input, shape index: {}]   ;;  %s3429_s7 = inlined_call_operand.hbm [shape: bf16[32,32], index: 7, kind: input, shape index: {}]   ;;  %s3430_s8 = inlined_call_operand.vmem [shape: bf16[4,8,32], index: 8, kind: input, shape index: {}]   ;;  %s3431_s9 = inlined_call_operand.hbm [shape: f32[2,8,32], index: 9, kind: output, shape index: {0}]   ;;  %s3432_s10 = inlined_call_operand.hbm [shape: f32[2,4,8,8], index: 10, kind: output, shape index: {1}]  }
   0x1   :  { %3451 = sst [smem:[#allocation31_spill]] %s3423_s1 }
   0x2   :  { %3452 = sst [smem:[#allocation32_spill]] %s3428_s6 }
   0x3   :  { %3453 = sst [smem:[#allocation33_spill]] %s3430_s8 }
   0x4   :  { %3454 = sst [smem:[#allocation34_spill]] %s3431_s9 }
   0x5   :  { %3455 = sst [smem:[#allocation35_spill]] %s3432_s10 }
   0x6   :  { %16 = vsyncpa [#allocation5], 0 }
   0x7   :  { %18 = vsyncpa [#allocation5 + $0x1], 0 }
   0x8   :  { %19 = vsyncpa [#allocation8], 0 }
   0x9   :  { %21 = vsyncpa [#allocation8 + $0x1], 0 }
   0xa   :  { %22 = vsyncpa [#allocation11], 0 }
   0xb   :  { %24 = vsyncpa [#allocation11 + $0x1], 0 }
   0xc   :  { %25 = vsyncpa [#allocation14], 0 }
   0xd   :  { %26 = vsyncpa [#allocation6], 0 }
   0xe   :  { %28 = vsyncpa [#allocation6 + $0x1], 0 }
   0xf   :  { %29 = vsyncpa [#allocation17], 0 }
  0x10   :  { %31 = vsyncpa [#allocation17 + $0x1], 0  ;;  %s2876_s13 = smov 0   ;;  %s2878_s14 = smov 0  }
  0x11   :  { %s2880_s15 = smov 0   ;;  %s2882_s16 = smov 0  }
  0x12   :  { %s2884_s17 = smov 0   ;;  %s2886_s18 = smov 0  }
  0x13 LB: > { %3456 = sst [smem:[#allocation25_spill]] %s2779_s13  ;;  %s2907_s19 = sadd.s32 4294967295, %s2799_s18   ;;  %s2799_s18 = sphi %s2886_s18, %s37_s18   ;;  %s2795_s17 = sphi %s2884_s17, %s3501_s17   ;;  %s2791_s16 = sphi %s2882_s16, %s3500_s16   ;;  %s2787_s15 = sphi %s2880_s15, %s3496_s15   ;;  %s2783_s14 = sphi %s2878_s14, %s3499_s14   ;;  %s2779_s13 = sphi %s2876_s13, %s3498_s13  }
  0x14   : > { %3457 = sst [smem:[#allocation26_spill]] %s2787_s15  ;;  %s2192_s20 = sadd.s32 4294967294, %s2799_s18  }
  0x15   : > { %p71_p0 = scmp.ne.s32.totalorder %s2783_s14, %s2779_s13  ;;  %p3443_p1 = scmp.eq.s32.totalorder %s2907_s19, 0 }
  0x16   : > { %p293_p3 = scmp.eq.s32.totalorder %s2192_s20, 1  ;;  %p2193_p5 = scmp.ge.s32.totalorder %s2799_s18, 1 }
  0x17   : > { %p2916_p4 = por %p3443_p1, %p71_p0  ;;  %p328_p7 = scmp.lt.s32.totalorder %s2799_s18, 3 }
  0x18   : > { %p2921_p6 = por %p293_p3, %p71_p0  ;;  %s2801_s24 = smov [#allocation12]  }
  0x19   : > { %s3458_s21 = scalar_select %p2916_p4, 1, 0 }
  0x1a   : > { %s3459_s22 = scalar_select %p2921_p6, 1, 0 }
  0x1b   : > { %p2926_p8 = pnand %p2193_p5, %p328_p7  ;;  %s343_s25 = sshll.u32 %s2801_s24, 4  ;;  %s344_s25 = int_to_ptr.vmem [resolvable:$true] %s343_s25 }
  0x1c   : > { %3460 = sst [smem:[#allocation27_spill]] %s3459_s22  ;;  %s49_s27 = sadd.s32 1, %s2795_s17 }
  0x1d   : > { %s3461_s23 = scalar_select %p2926_p8, 1, 0 }
  0x1e   : > { %p2391_p9 = pneg %p2926_p8  ;;  %s2520_s28 = scalar_lea.vmem %s344_s25, 256 }
  0x1f   : > { %p2521_p13 = scmp.ne.s32.totalorder %s344_s25, %s2520_s28  ;;  %p2528_p5 = scmp.lt.s32.totalorder %s344_s25, %s344_s25 }
  0x20   : > { %p2935_p11 = pnand %p2391_p9, %p3443_p1  ;;  %p2529_p7 = scmp.lt.s32.totalorder %s2520_s28, %s2520_s28 }
  0x22   : > { %p3444_p12 = pneg %p2935_p11  ;;  %p2530_p2 = por %p2529_p7, %p2528_p5 }
  0x24   : > { %p2523_p0 = pnand %p2521_p13, %p3444_p12 }
  0x26   : > { %p2524_p3 = pneg %p2523_p0 }
  0x28   : > { %p2531_p10 = pnand %p2530_p2, %p2524_p3 }
  0x2a   : > { %2534 = shalt.err (!%p2531_p10)
}
  0x2b   : > { %s3433_s29 = smov 64   ;;  %s3434_s30 = smov 4  }
  0x2c   : > { %s3463_s6 = sld [smem:[#allocation32_spill]]  ;;  %p51_p2 = scmp.ge.s32.totalorder %s49_s27, 2 }
  0x2d   : > { %s58_s20 = sadd.s32 1, %s2787_s15  ;;  %p65_p9 = scmp.ne.s32.totalorder %s2787_s15, %s2783_s14 }
  0x2e   : > { %p66_p10 = scmp.eq.s32.totalorder %s2799_s18, 0  ;;  %s3503_s27 = smov (%p51_p2, %s49_s27), 0 }
  0x2f   : > { %3464 = sst [smem:[#allocation28_spill]] %s3503_s27  ;;  %p3465_p0 = scmp.eq.s32.totalorder %s2907_s19, 1 }
  0x30   : > { %p67_p13 = por %p66_p10, %p65_p9  ;;  %s53_s28 = ssub.s32 %s2795_s17, %s3503_s27 }
  0x31   : > { %p2961_p3 = por %p3465_p0, %p65_p9  ;;  %p2420_p5 = scmp.lt.s32.totalorder %s2799_s18, 2 }
  0x32   : > { %2394 = dma.hbm_to_vmem [thread:$0]  (!%p2935_p11), %s3463_s6, 256, %s344_s25, [#allocation11], %s3433_s29, %s3433_s29, %s3434_s30  }
  0x33   : > { %s3466_s24 = scalar_select %p2961_p3, 1, 0 }
  0x34   : > { %p56_p7 = scmp.eq.s32.totalorder %s53_s28, 0  ;;  %s2969_s11 = sand.u32 1, %s2787_s15  }
  0x35   : > { %3467 = sst [smem:[#allocation29_spill]] %s3466_s24  ;;  %s2972_s25 = sshll.u32 %s2969_s11, 2 }
  0x36   : > { %s2975_s12 = sshll.u32 %s2795_s17, 6  ;;  %p2980_p2 = pnand %p2420_p5, %p67_p13 }
  0x37   : > { %s2978_s29 = scalar_select %p56_p7, %s2787_s15, %s58_s20  }
  0x38   : > { %s3449_s6 = sand.u32 1, %s2799_s18   ;;  %s3470_s1 = sld [smem:[#allocation31_spill]] }
  0x39   : > { %3468 = sst [smem:[#allocation30_spill]] %s2978_s29  ;;  %s396_s13 = scalar_lea.vmem [#allocation7], %s2972_s25 }
  0x3a   : > { %s403_s9 = sshll.u32 %s396_s13, 4  ;;  %s2992_s10 = scalar_lea.sflag [#allocation8], %s3449_s6  ;;  %s404_s9 = int_to_ptr.vmem [resolvable:$true] %s403_s9 }
  0x3b   : > { %p3445_p9 = pneg %p2980_p2  ;;  %s2548_s20 = scalar_lea.vmem %s404_s9, 64 }
  0x3c   : > { %p2549_p10 = scmp.ne.s32.totalorder %s404_s9, %s2548_s20  ;;  %s2804_s29 = smov [#allocation7]  }
  0x3d   : > { %s2553_s15 = sshll.u32 %s2804_s29, 4  ;;  %s2554_s15 = int_to_ptr.vmem [resolvable:$false] %s2553_s15 }
  0x3e   : > { %s401_s22 = scalar_lea.hbm %s3470_s1, %s2975_s12  ;;  %p2551_p13 = pnand %p2549_p10, %p3445_p9 }
  0x3f   : > { %s2555_s24 = scalar_lea.vmem %s2554_s15, 128  ;;  %p2556_p5 = scmp.lt.s32.totalorder %s404_s9, %s2554_s15 }
  0x40   : > { %p2552_p0 = pneg %p2551_p13  ;;  %p2557_p7 = scmp.lt.s32.totalorder %s2555_s24, %s2548_s20 }
  0x42   : > { %p2558_p1 = por %p2557_p7, %p2556_p5 }
  0x44   : > { %p2559_p12 = pnand %p2558_p1, %p2552_p0 }
  0x46   : > { %2562 = shalt.err (!%p2559_p12)
}
  0x47   : > { %2404 = dma.hbm_to_vmem [thread:$0]  (!%p2980_p2), %s401_s22, 64, %s404_s9, %s2992_s10  }
  0x48   : > { %s2805_s13 = smov [#allocation13]   ;;  %p3471_p13 = pneg %p2935_p11 }
  0x49   : > { %s356_s27 = sshll.u32 %s2805_s13, 4  ;;  %s357_s27 = int_to_ptr.vmem [resolvable:$true] %s356_s27 }
  0x4a   : > { %s2574_s28 = scalar_lea.vmem %s357_s27, 256  ;;  %p2582_p3 = scmp.lt.s32.totalorder %s357_s27, %s357_s27 }
  0x4b   : > { %p2575_p10 = scmp.ne.s32.totalorder %s357_s27, %s2574_s28  ;;  %p2583_p4 = scmp.lt.s32.totalorder %s2574_s28, %s2574_s28 }
  0x4d   : > { %p2577_p9 = pnand %p2575_p10, %p3471_p13  ;;  %p2584_p8 = por %p2583_p4, %p2582_p3 }
  0x4f   : > { %p2578_p6 = pneg %p2577_p9 }
  0x51   : > { %p2585_p5 = pnand %p2584_p8, %p2578_p6 }
  0x53   : > { %2588 = shalt.err (!%p2585_p5)
}
  0x54   : > { %s3472_s15 = smov 4   ;;  %s3473_s29 = smov 64  }
  0x55   : > { %2397 = dma.hbm_to_vmem [thread:$0]  (!%p2935_p11), %s3429_s7, 256, %s357_s27, [#allocation14], %s3473_s29, %s3473_s29, %s3472_s15  }
  0x56   : > { %s383_s13 = scalar_lea.hbm %s3422_s0, %s2975_s12  ;;  %s377_s28 = scalar_lea.vmem [#allocation4], %s2972_s25 }
  0x57   : > { %s385_s6 = sshll.u32 %s377_s28, 4  ;;  %s374_s1 = scalar_lea.sflag [#allocation5], %s2969_s11  ;;  %s386_s6 = int_to_ptr.vmem [resolvable:$true] %s385_s6 }
  0x58   : > { %s2602_s26 = scalar_lea.vmem %s386_s6, 64  ;;  %p3474_p4 = pneg %p2980_p2 }
  0x59   : > { %p2603_p1 = scmp.ne.s32.totalorder %s386_s6, %s2602_s26  ;;  %s2806_s9 = smov [#allocation4]  }
  0x5a   : > { %s2607_s22 = sshll.u32 %s2806_s9, 4  ;;  %s2608_s22 = int_to_ptr.vmem [resolvable:$false] %s2607_s22 }
  0x5b   : > { %p2605_p6 = pnand %p2603_p1, %p3474_p4  ;;  %s2609_s8 = scalar_lea.vmem %s2608_s22, 128 }
  0x5c   : > { %p2610_p12 = scmp.lt.s32.totalorder %s386_s6, %s2608_s22  ;;  %p2611_p11 = scmp.lt.s32.totalorder %s2609_s8, %s2602_s26 }
  0x5d   : > { %p2606_p8 = pneg %p2605_p6 }
  0x5e   : > { %p2612_p3 = por %p2611_p11, %p2610_p12 }
  0x60   : > { %p2613_p9 = pnand %p2612_p3, %p2606_p8 }
  0x62   : > { %2616 = shalt.err (!%p2613_p9)
}
  0x63   : > { %2401 = dma.hbm_to_vmem [thread:$0]  (!%p2980_p2), %s383_s13, 64, %s386_s6, %s374_s1  }
  0x64   : > { %s419_s29 = scalar_lea.hbm %s3424_s2, %s2975_s12  ;;  %s414_s24 = scalar_lea.vmem [#allocation9], %s2972_s25 }
  0x65   : > { %s421_s20 = sshll.u32 %s414_s24, 4  ;;  %p3475_p7 = pmov %p3474_p4  ;;  %s422_s20 = int_to_ptr.vmem [resolvable:$true] %s421_s20 }
  0x66   : > { %s2630_s28 = scalar_lea.vmem %s422_s20, 64  ;;  %s2807_s8 = smov [#allocation9]  }
  0x67   : > { %p2631_p0 = scmp.ne.s32.totalorder %s422_s20, %s2630_s28  ;;  %s2635_s26 = sshll.u32 %s2807_s8, 4  ;;  %s2636_s26 = int_to_ptr.vmem [resolvable:$false] %s2635_s26 }
  0x68   : > { %s2637_s9 = scalar_lea.vmem %s2636_s26, 128  ;;  %p2638_p5 = scmp.lt.s32.totalorder %s422_s20, %s2636_s26 }
  0x69   : > { %p2633_p10 = pnand %p2631_p0, %p3475_p7  ;;  %p2639_p1 = scmp.lt.s32.totalorder %s2637_s9, %s2630_s28 }
  0x6b   : > { %p2634_p13 = pneg %p2633_p10  ;;  %p2640_p4 = por %p2639_p1, %p2638_p5 }
  0x6d   : > { %p2641_p6 = pnand %p2640_p4, %p2634_p13 }
  0x6f   : > { %2644 = shalt.err (!%p2641_p6)
}
  0x70   : > { %2407 = dma.hbm_to_vmem [thread:$0]  (!%p2980_p2), %s419_s29, 64, %s422_s20, %s2992_s10  }
  0x71   : > { %s2203_s1 = sshll.u32 %s2795_s17, 4  ;;  %s441_s6 = scalar_lea.vmem [#allocation10], %s2969_s11 }
  0x72   : > { %s448_s25 = sshll.u32 %s441_s6, 4  ;;  %s446_s22 = scalar_lea.hbm %s3426_s4, %s2203_s1  ;;  %s449_s25 = int_to_ptr.vmem [resolvable:$true] %s448_s25 }
  0x73   : > { %s3476_s27 = sand.u32 1, %s2799_s18   ;;  %s2658_s24 = scalar_lea.vmem %s449_s25, 16 }
  0x74   : > { %s439_s15 = scalar_lea.sflag [#allocation11], %s3476_s27  ;;  %p2659_p8 = scmp.ne.s32.totalorder %s449_s25, %s2658_s24 }
  0x75   : > { %p3477_p12 = pmov %p3475_p7  ;;  %s2808_s28 = smov [#allocation10]  }
  0x76   : > { %s2663_s8 = sshll.u32 %s2808_s28, 4  ;;  %s2664_s8 = int_to_ptr.vmem [resolvable:$false] %s2663_s8 }
  0x77   : > { %p2661_p11 = pnand %p2659_p8, %p3477_p12  ;;  %s2665_s10 = scalar_lea.vmem %s2664_s8, 32 }
  0x78   : > { %p2666_p9 = scmp.lt.s32.totalorder %s449_s25, %s2664_s8  ;;  %p2667_p0 = scmp.lt.s32.totalorder %s2665_s10, %s2658_s24 }
  0x79   : > { %p2662_p3 = pneg %p2661_p11 }
  0x7a   : > { %p2668_p7 = por %p2667_p0, %p2666_p9 }
  0x7c   : > { %p2669_p10 = pnand %p2668_p7, %p2662_p3 }
  0x7e   : > { %2672 = shalt.err (!%p2669_p10)
}
  0x7f   : > { %2410 = dma.hbm_to_vmem [thread:$0]  (!%p2980_p2), %s446_s22, 16, %s449_s25, %s439_s15  }
  0x80   : > { %p3478_p13 = scmp.ne.s32.totalorder %s3461_s23, 0 }
  0x81   : > { %s3050_s11 = sand.u32 (!%p3478_p13), 1, %s2783_s14   ;;  %p3479_p5 = scmp.ne.s32.totalorder (!%p3478_p13), %s3458_s21, 0 }
  0x82   : > { %457 = sbr.rel (%p3478_p13) target bundleno = 1436 (0x59c), region = 56  ;;  %s3053_s29 = sshll.u32 (!%p3478_p13), %s3050_s11, 2 }
  0x83   : > { %s460_s20 = scalar_lea.sflag (!%p3478_p13), [#allocation5], %s3050_s11  ;;  %s463_s26 = scalar_lea.vmem (!%p3478_p13), [#allocation4], %s3053_s29 }
  0x87   : > { %2750 = dma.done.wait (%p3479_p5), %s460_s20, 64  }
  0x88   : > { %2752 = vsyncadd (%p3479_p5), %s460_s20, 4294967232  ;;  %s468_s23 = sand.u32 1, %s2907_s19   ;;  %s472_s9 = scalar_lea.vmem [#allocation7], %s3053_s29 }
  0x89   : > { %s469_s30 = scalar_lea.sflag [#allocation8], %s468_s23 }
  0x8a   : > { %2754 = dma.done.wait (%p3479_p5), %s469_s30, 128  }
  0x8b   : > { %2756 = vsyncadd (%p3479_p5), %s469_s30, 4294967168  ;;  %s481_s1 = scalar_lea.vmem [#allocation9], %s3053_s29  ;;  %s487_s6 = scalar_lea.sflag [#allocation11], %s468_s23 }
  0x8c   : > { %s489_s25 = scalar_lea.vmem [#allocation10], %s3050_s11 }
  0x8d   : > { %2758 = dma.done.wait (%p3479_p5), %s487_s6, 16  }
  0x8e   : > { %2760 = vsyncadd (%p3479_p5), %s487_s6, 4294967280  ;;  %p3480_p2 = scmp.eq.s32.totalorder %s2907_s19, 0 }
  0x90   : > { %2762 = dma.done.wait (%p3480_p2), [#allocation11], 256   ;;  %p3481_p1 = pmov %p3480_p2 }
  0x92   : > { %2764 = vsyncadd (%p3481_p1), [#allocation11], 4294967040  ;;  %p3482_p4 = pmov %p3481_p1 }
  0x93   : > { %p3483_p6 = pmov %p3481_p1 }
  0x94   : > { %2766 = dma.done.wait (%p3482_p4), [#allocation14], 256  }
  0x95   : > { %2768 = vsyncadd (%p3483_p6), [#allocation14], 4294967040  ;;  %v2809_v0 = vmov 0.0   ;;  %vm2810_vm0 = vmmov 0   ;;  %v2487_v1 = vld [vmem:[#allocation12 + $0x8] sm:$0xff]   ;;  %v2488_v2 = vld [vmem:[#allocation12] sm:$0xff]   ;;  %v704_v25 = vlaneseq }
  0x96   : > { %2275 = vmatprep.subr.bf16.mxu0 %v2809_v0  ;;  %2279 = vmatprep.mubr.msk.bf16.mxu0 %vm2810_vm0, %v2809_v0  ;;  %v572_v3 = vld [vmem:[%s472_s9] sm:$0xf]  ;;  %vm589_vm1 = vcmask 261120   ;;  %v2490_v5 = vld [vmem:[%s3427_s5] sm:$0xff]   ;;  %v2811_v7 = vmov 0   ;;  %s2812_s22 = smov 104  }
  0x97   : > { %2283 = vmatprep.subr.bf16.mxu1 %v2809_v0  ;;  %2287 = vmatprep.mubr.msk.bf16.mxu1 %vm2810_vm0, %v2809_v0  ;;  %v2489_v4 = vld [vmem:[%s3427_s5 + $0x8] sm:$0xff]   ;;  %v1048_v6 = vld [vmem:[%s463_s26] sm:$0xf]  ;;  %s2813_s27 = smov 120   ;;  %s2814_s15 = smov 112   ;;  %v2491_v18 = vld [vmem:[#allocation13 + $0x8] sm:$0xff]  }
  0x98   : > { %2276 = vmatpush3.bf16.msra.mxu0 %v2487_v1  ;;  %2486 = vset.pattern.permute.xlu0 %v2811_v7  ;;  %v2492_v19 = vld [vmem:[#allocation13] sm:$0xff]   ;;  %p560_p8 = scmp.lt.s32.totalorder %s2791_s16, 1  ;;  %v2815_v23 = vmov 1983009808   ;;  %v2816_v26 = vmov 1934713408  }
  0x99   : > { %2277 = vmatprep.subr.bf16.mxu0 %v2809_v0  ;;  %2284 = vmatpush3.bf16.msra.mxu1 %v2491_v18  ;;  %v633_v20 = vld [vmem:[%s481_s1] sm:$0xf]  ;;  %v702_v24 = vunpack.c.l.s4 %v2815_v23  ;;  %v719_v27 = vunpack.c.l.s4 %v2816_v26  ;;  %v3126_v29 = vshrl.u32 %v704_v25, 7  ;;  %vm866_vm3 = vcmask 60416   ;;  %s2211_s29 = sshll.u32 %s3050_s11, 5  ;;  %s3486_s9 = sld [smem:[#allocation33_spill]] }
  0x9a   : > { %2285 = vmatprep.subr.bf16.mxu1 %v2809_v0  ;;  %s561_s24 = scalar_select %p560_p8, %s2791_s16, 1  ;;  %vm1307_vm4 = vcmask 64512   ;;  %vm1561_vm11 = vcmask 1043456  }
  0x9b   : > { %v703_v28 = vunpack.c.0.s8 %v702_v24  ;;  %v720_v30 = vunpack.c.0.s8 %v719_v27  ;;  %s3272_s26 = scalar_lea.vmem [#allocation16], %s2211_s29  ;;  %s3487_s13 = sld [smem:[#allocation29_spill]] }
  0x9c   : > { %2278 = vmatpush3.bf16.msra.mxu0 %v2488_v2  ;;  %s2212_s28 = sshll.u32 %s561_s24, 3  ;;  %s1949_s10 = scalar_lea.sflag [#allocation17], %s3050_s11 }
  0x9d   : > { %2291 = vmatprep.subr.bf16.mxu0 %v2809_v0  ;;  %2286 = vmatpush3.bf16.msra.mxu1 %v2492_v19  ;;  %s566_s20 = scalar_lea.vmem %s3425_s3, %s2212_s28  ;;  %v3129_v31 = vsub.s32 %v703_v28, %v3126_v29  ;;  %v3133_v35 = vsub.s32 %v720_v30, %v3126_v29  ;;  %s3488_s28 = sld [smem:[#allocation35_spill]] }
  0x9e   : > { %2299 = vmatprep.subr.bf16.mxu1 %v2809_v0  ;;  %v1278_v21 = vld [vmem:[%s566_s20] sm:$0xff]  ;;  %s2817_s29 = smov [#allocation16]  }
  0x9f   : > { %2280 = vmatmul.mubr.msk.bf16.vlgmr.msra.gmra.mxu0 %vm589_vm1, %v572_v3  ;;  %vm1279_vm2 = vcmp.ne.f32.partialorder %v1278_v21, 0.0  ;;  %s2677_s23 = sshll.u32 %s2817_s29, 4  ;;  %s2678_s23 = int_to_ptr.vmem [resolvable:$false] %s2677_s23 }
  0xa0   : > { %2292 = vmatpush3.bf16.msra.mxu0 %v2489_v4  ;;  %2295 = vmatprep.mubr.msk.bf16.mxu0 %vm2810_vm0, %v2809_v0  ;;  %v1282_v22 = vsel %vm1279_vm2, 1, %v2811_v7 }
  0xa1   : > { %2293 = vmatprep.subr.bf16.mxu0 %v2809_v0  ;;  %2288 = vmatmul.mubr.msk.bf16.vlgmr.msra.gmra.mxu1 %vm589_vm1, %v633_v20  ;;  %p3489_p11 = scmp.ne.s32.totalorder %s3487_s13, 0 }
  0xa2   : > { %2301 = vmatprep.mubr.msk.bf16.mxu1 %vm2810_vm0, %v2809_v0 }
  0xa4   : > { %2294 = vmatpush3.bf16.msra.mxu0 %v2490_v5 }
  0xa5   : > { %2305 = vmatprep.subr.bf16.mxu0 %v2809_v0 }
  0xa7   : > { %2296 = vmatmul.mubr.msk.bf16.vlgmr.msra.gmra.mxu0 %vm589_vm1, %v1048_v6 }
  0xa8   : > { %2307 = vmatprep.mubr.msk.bf16.mxu0 %vm2810_vm0, %v2809_v0 }
 0x15f   : > { %v627_v8 = vpop.f32.mrf.mxu0 }
 0x160   : > { %v693_v9 = vpack.c.bf16 %v627_v8, %v627_v8 }
 0x161   : > { %v2281_v10 = vpop.f32.mrf.mxu0 }
 0x162   : > { %699 = vrot.lane.b32.xlu1 %v693_v9, %s2812_s22  ;;  %695 = vrot.lane.b32.xlu0 %v693_v9, %s2813_s27  ;;  %v707_v43 = vrot.slane %v693_v9, %v3129_v31 }
 0x163   : > { %v630_v11 = vpop.f32.mrf.mxu0 }
 0x165   : > { %v2282_v12 = vpop.f32.mrf.mxu0 }
 0x166   : > { %697 = vrot.lane.b32.xlu0 %v693_v9, %s2814_s15 }
 0x167   : > { %v1103_v13 = vpop.f32.mrf.mxu0 }
 0x168   : > { %v1109_v14 = vpack.c.bf16 %v1103_v13, %v1103_v13 }
 0x169   : > { %v2297_v15 = vpop.f32.mrf.mxu0 }
 0x16a   : > { %1113 = vrot.lane.b32.xlu0 %v1109_v14, %s2814_s15  ;;  %1111 = vrot.lane.b32.xlu1 %v1109_v14, %s2813_s27  ;;  %v1123_v49 = vrot.slane %v1109_v14, %v3129_v31 }
 0x16b   : > { %v1106_v16 = vpop.f32.mrf.mxu0 }
 0x16d   : > { %v2298_v17 = vpop.f32.mrf.mxu0 }
 0x16e   : > { %1115 = vrot.lane.b32.xlu1 %v1109_v14, %s2812_s22  ;;  %1284 = vperm.xlu0 %2486, %v1282_v22  }
 0x1d4   : > { %v700_v32 = vpop.permute.xlu1 %699  ;;  %v696_v33 = vpop.permute.xlu0 %695 }
 0x1d5   : > { %v749_v34 = vrot.slane %v700_v32, %v3129_v31  ;;  %v741_v36 = vrot.slane %v696_v33, %v3129_v31 }
 0x1d7   : > { %v750_v37 = vcombine.low %v741_v36, %v749_v34  ;;  %v751_v38 = vcombine.high %v741_v36, %v749_v34 }
 0x1d8   : > { %v698_v39 = vpop.permute.xlu0 %697 }
 0x1d9   : > { %v758_v40 = vrot.slane %v750_v37, %v3133_v35  ;;  %v765_v41 = vrot.slane %v751_v38, %v3133_v35  ;;  %v715_v42 = vrot.slane %v698_v39, %v3129_v31 }
 0x1db   : > { %v766_v44 = vcombine.high %v758_v40, %v2811_v7  ;;  %v716_v45 = vcombine.low %v707_v43, %v715_v42  ;;  %v717_v46 = vcombine.high %v707_v43, %v715_v42  ;;  %v767_v48 = vcombine.high %v765_v41, %v2811_v7 }
 0x1dc   : > { %v1114_v47 = vpop.permute.xlu0 %1113  ;;  %v1112_v51 = vpop.permute.xlu1 %1111  ;;  %v773_v52 = vshrl.u32 %v758_v40, 16  ;;  %v789_v56 = vshrl.u32 %v765_v41, 16 }
 0x1dd   : > { %v1131_v50 = vrot.slane %v1114_v47, %v3129_v31  ;;  %v724_v53 = vrot.slane %v716_v45, %v3133_v35  ;;  %v731_v54 = vrot.slane %v717_v46, %v3133_v35  ;;  %v781_v55 = vshrl.u32 %v766_v44, 16 }
 0x1de   : > { %v797_v63 = vshrl.u32 %v767_v48, 16  ;;  %v1157_v16 = vrot.slane %v1112_v51, %v3129_v31 }
 0x1df   : > { %v1132_v57 = vcombine.low %v1123_v49, %v1131_v50  ;;  %v1133_v58 = vcombine.high %v1123_v49, %v1131_v50  ;;  %v732_v59 = vcombine.high %v724_v53, %v2811_v7  ;;  %v733_v60 = vcombine.high %v731_v54, %v2811_v7 }
 0x1e0   : > { %v770_v61 = vpack.i.b16 %v758_v40, %v724_v53  ;;  %v772_v62 = vshrl.u32 %v724_v53, 16  ;;  %v786_v1 = vpack.i.b16 %v765_v41, %v731_v54  ;;  %v788_v2 = vshrl.u32 %v731_v54, 16  ;;  %v1116_v13 = vpop.permute.xlu1 %1115 }
 0x1e1   : > { %v1140_v3 = vrot.slane %v1132_v57, %v3133_v35  ;;  %v778_v5 = vpack.i.b16 %v766_v44, %v732_v59  ;;  %v780_v6 = vshrl.u32 %v732_v59, 16  ;;  %v794_v8 = vpack.i.b16 %v767_v48, %v733_v60 }
 0x1e2   : > { %v774_v4 = vpack.i.b16 %v773_v52, %v772_v62  ;;  %v790_v9 = vpack.i.b16 %v789_v56, %v788_v2  ;;  %v796_v10 = vshrl.u32 %v733_v60, 16  ;;  %v800_v11 = vcombine.low %v770_v61, %v786_v1 }
 0x1e3   : > { %v1147_v12 = vrot.slane %v1133_v58, %v3133_v35  ;;  %v782_v14 = vpack.i.b16 %v781_v55, %v780_v6  ;;  %v808_v15 = vcombine.low %v778_v5, %v794_v8  ;;  %v1165_v21 = vrot.slane %v1116_v13, %v3129_v31 }
 0x1e4   : > { %v798_v17 = vpack.i.b16 %v797_v63, %v796_v10  ;;  %v825_v18 = vcombine.low %v774_v4, %v790_v9  ;;  %v807_v19 = vrot.slane %v800_v11, %v3129_v31  ;;  %v1148_v23 = vcombine.high %v1140_v3, %v2811_v7 }
 0x1e5   : > { %v815_v20 = vrot.slane %v808_v15, %v3129_v31  ;;  %v1149_v24 = vcombine.high %v1147_v12, %v2811_v7  ;;  %v1166_v27 = vcombine.low %v1157_v16, %v1165_v21  ;;  %v1167_v28 = vcombine.high %v1157_v16, %v1165_v21 }
 0x1e6   : > { %v833_v22 = vcombine.low %v782_v14, %v798_v17  ;;  %v832_v30 = vrot.slane %v825_v18, %v3129_v31  ;;  %v1188_v34 = vshrl.u32 %v1140_v3, 16  ;;  %v1196_v39 = vshrl.u32 %v1148_v23, 16 }
 0x1e7   : > { %v816_v26 = vcombine.low %v807_v19, %v815_v20  ;;  %v1174_v36 = vrot.slane %v1166_v27, %v3133_v35  ;;  %v1181_v37 = vrot.slane %v1167_v28, %v3133_v35  ;;  %v1204_v40 = vshrl.u32 %v1147_v12, 16 }
 0x1e8   : > { %v840_v32 = vrot.slane %v833_v22, %v3129_v31  ;;  %v1212_v41 = vshrl.u32 %v1149_v24, 16 }
 0x1e9   : > { %v823_v33 = vrot.slane %v816_v26, %v3133_v35  ;;  %v1182_v44 = vcombine.high %v1174_v36, %v2811_v7  ;;  %v1183_v45 = vcombine.high %v1181_v37, %v2811_v7  ;;  %v1186_v47 = vpack.i.b16 %v1174_v36, %v1140_v3 }
 0x1ea   : > { %v841_v38 = vcombine.low %v832_v30, %v840_v32  ;;  %v1189_v48 = vshrl.u32 %v1174_v36, 16  ;;  %v1202_v49 = vpack.i.b16 %v1181_v37, %v1147_v12  ;;  %v1205_v53 = vshrl.u32 %v1181_v37, 16 }
 0x1eb   : > { %v824_v42 = vcombine.high %v823_v33, %v2811_v7  ;;  %v854_v43 = vshrl.u32 %v823_v33, 16  ;;  %v1194_v51 = vpack.i.b16 %v1182_v44, %v1148_v23  ;;  %v1197_v52 = vshrl.u32 %v1182_v44, 16 }
 0x1ec   : > { %v848_v46 = vrot.slane %v841_v38, %v3133_v35  ;;  %v1190_v57 = vpack.i.b16 %v1189_v48, %v1188_v34  ;;  %v1206_v59 = vpack.i.b16 %v1205_v53, %v1204_v40  ;;  %v1210_v60 = vpack.i.b16 %v1183_v45, %v1149_v24 }
 0x1ed   : > { %v862_v50 = vshrl.u32 %v824_v42, 16  ;;  %v1198_v58 = vpack.i.b16 %v1197_v52, %v1196_v39  ;;  %v1213_v61 = vshrl.u32 %v1183_v45, 16  ;;  %v1216_v2 = vcombine.low %v1186_v47, %v1202_v49  ;;  %v687_v39 = vpop.f32.mrf.mxu1  ;;  %v1285_v47 = vpop.permute.xlu0 %1284  ;;  %v1749_v49 = vld [vmem:[%s3486_s9 + $0x8] sm:$0xf] }
 0x1ee   : > { %v849_v54 = vcombine.high %v848_v46, %v2811_v7  ;;  %v852_v55 = vpack.i.b16 %v848_v46, %v823_v33  ;;  %v855_v56 = vshrl.u32 %v848_v46, 16  ;;  %v1224_v4 = vcombine.low %v1194_v51, %v1210_v60 }
 0x1ef   : > { %v1214_v3 = vpack.i.b16 %v1213_v61, %v1212_v41  ;;  %v1241_v5 = vcombine.low %v1190_v57, %v1206_v59  ;;  %v1223_v10 = vrot.slane %v1216_v2, %v3129_v31  ;;  %v2289_v40 = vpop.f32.mrf.mxu1  ;;  %v1290_v44 = vsub.s32 0, %v3126_v29 }
 0x1f0   : > { %v856_v62 = vpack.i.b16 %v855_v56, %v854_v43  ;;  %v860_v63 = vpack.i.b16 %v849_v54, %v824_v42  ;;  %v863_v1 = vshrl.u32 %v849_v54, 16  ;;  %867 = vst.msk [vmem:[#allocation2] sm:$0xf] %vm866_vm3, %v852_v55  ;;  %v1231_v8 = vrot.slane %v1224_v4, %v3129_v31  ;;  %v1280_v43 = vld [vmem:[%s489_s25] sm:$0x1] }
 0x1f1   : > { %v1249_v9 = vcombine.low %v1198_v58, %v1214_v3  ;;  %v1248_v11 = vrot.slane %v1241_v5, %v3129_v31  ;;  %v690_v41 = vpop.f32.mrf.mxu1  ;;  %vm1281_vm5 = vcmp.ne.f32.partialorder %v1280_v43, 0.0  ;;  %v1300_v48 = vand.u32 127, %v704_v25 }
 0x1f2   : > { %v864_v6 = vpack.i.b16 %v863_v1, %v862_v50  ;;  %868 = vst.msk [vmem:[#allocation2 + $0x4] sm:$0xf] %vm866_vm3, %v856_v62  ;;  %869 = vst.msk [vmem:[#allocation2 + $0x8] sm:$0xf] %vm866_vm3, %v860_v63  ;;  %v1232_v13 = vcombine.low %v1223_v10, %v1231_v8  ;;  %v1287_v45 = vsel %vm1281_vm5, 1, %v2811_v7  ;;  %vm1286_vm7 = vcmp.eq.s32.totalorder %v1285_v47, 1 }
 0x1f3   : > { %v1256_v12 = vrot.slane %v1249_v9, %v3129_v31  ;;  %v2290_v42 = vpop.f32.mrf.mxu1  ;;  %v1291_v46 = vrot.slane %v1287_v45, %v1290_v44  ;;  %vm1301_vm8 = vcmp.le.s32.totalorder %v1300_v48, %v3126_v29  ;;  %v871_v10 = vpack.c.bf16 %v687_v39, %v687_v39 }
 0x1f4   : > { %870 = vst.msk [vmem:[#allocation2 + $0xc] sm:$0xf] %vm866_vm3, %v864_v6  ;;  %v1239_v20 = vrot.slane %v1232_v13, %v3133_v35 }
 0x1f5   : > { %v1257_v14 = vcombine.low %v1248_v11, %v1256_v12  ;;  %vm1292_vm6 = vcmp.eq.s32.totalorder %v1291_v46, 1 }
 0x1f6   : > { %v1269_v24 = vshrl.u32 %v1239_v20, 16  ;;  %v1240_v33 = vcombine.high %v1239_v20, %v2811_v7  ;;  %vm1293_vm9 = vmand %vm1286_vm7, %vm1292_vm6 }
 0x1f7   : > { %v1303_v15 = vld [vmem:[#allocation2] sm:$0xf]  ;;  %v1264_v18 = vrot.slane %v1257_v14, %v3133_v35  ;;  %vm3204_vm10 = vmand %vm1293_vm9, %vm1301_vm8 }
 0x1f8   : > { %v1312_v16 = vsel %vm1307_vm4, %v1303_v15, 0  ;;  %v1275_v37 = vshrl.u32 %v1240_v33, 16 }
 0x1f9   : > { %2300 = vmatpush3.bf16.xpose.msra.mxu1 %v1312_v16  ;;  %v1304_v17 = vld [vmem:[#allocation2 + $0x4] sm:$0xf]  ;;  %v1270_v21 = vshrl.u32 %v1264_v18, 16  ;;  %v1305_v22 = vld [vmem:[#allocation2 + $0x8] sm:$0xf]  ;;  %v1268_v23 = vpack.i.b16 %v1264_v18, %v1239_v20  ;;  %v1265_v30 = vcombine.high %v1264_v18, %v2811_v7 }
 0x1fa   : > { %v1358_v19 = vsel %vm1307_vm4, %v1304_v17, 0  ;;  %2311 = vmatprep.subr.bf16.mxu1 %v2809_v0  ;;  %v1404_v27 = vsel %vm1307_vm4, %v1305_v22, 0 }
 0x1fb   : > { %2306 = vmatpush3.bf16.xpose.msra.mxu0 %v1358_v19  ;;  %v1306_v26 = vld [vmem:[#allocation2 + $0xc] sm:$0xf]  ;;  %v1271_v28 = vpack.i.b16 %v1270_v21, %v1269_v24  ;;  %v1276_v34 = vshrl.u32 %v1265_v30, 16  ;;  %v1274_v36 = vpack.i.b16 %v1265_v30, %v1240_v33 }
 0x1fc   : > { %2317 = vmatprep.subr.bf16.mxu0 %v2809_v0  ;;  %v1450_v32 = vsel %vm1307_vm4, %v1306_v26, 0  ;;  %v885_v26 = vrot.slane %v871_v10, %v3129_v31 }
 0x1fd   : > { %v1277_v38 = vpack.i.b16 %v1276_v34, %v1275_v37 }
 0x200   : > { %2302 = vmatmul.mubr.msk.bf16.vlgmr.msra.gmra.mxu1 %vm1307_vm4, %v1268_v23 }
 0x201   : > { %2312 = vmatpush3.bf16.xpose.msra.mxu1 %v1404_v27  ;;  %2313 = vmatprep.mubr.msk.bf16.mxu1 %vm2810_vm0, %v2809_v0 }
 0x202   : > { %2308 = vmatmul.mubr.msk.bf16.vlgmr.msra.gmra.mxu0 %vm1307_vm4, %v1271_v28  ;;  %2323 = vmatprep.subr.bf16.mxu1 %v2809_v0 }
 0x203   : > { %2318 = vmatpush3.bf16.xpose.msra.mxu0 %v1450_v32  ;;  %2319 = vmatprep.mubr.msk.bf16.mxu0 %vm2810_vm0, %v2809_v0 }
 0x204   : > { %2329 = vmatprep.subr.bf16.mxu0 %v2809_v0 }
 0x208   : > { %2314 = vmatmul.mubr.msk.bf16.vlgmr.msra.gmra.mxu1 %vm1307_vm4, %v1274_v36 }
 0x209   : > { %2325 = vmatprep.mubr.msk.bf16.mxu1 %vm2810_vm0, %v2809_v0 }
 0x20a   : > { %2320 = vmatmul.mubr.msk.bf16.vlgmr.msra.gmra.mxu0 %vm1307_vm4, %v1277_v38 }
 0x20b   : > { %2331 = vmatprep.mubr.msk.bf16.mxu0 %vm2810_vm0, %v2809_v0 }
 0x2c0   : > { %v1348_v50 = vpop.f32.mrf.mxu1 }
 0x2c1   : > { %v1494_v51 = vsel %vm3204_vm10, %v1348_v50, -1000000.0 }
 0x2c2   : > { %v2303_v52 = vpop.f32.mrf.mxu1  ;;  %v1394_v53 = vpop.f32.mrf.mxu0  ;;  %v1498_v54 = vsel %vm1307_vm4, %v1494_v51, -inf }
 0x2c3   : > { %v1495_v25 = vsel %vm3204_vm10, %v1394_v53, -1000000.0  ;;  %1499 = vmax.xlane.f32.xlu1 %v1498_v54 }
 0x2c4   : > { %v1351_v55 = vpop.f32.mrf.mxu1  ;;  %v2309_v56 = vpop.f32.mrf.mxu0  ;;  %v1501_v29 = vsel %vm1307_vm4, %v1495_v25, -inf }
 0x2c5   : > { %1502 = vmax.xlane.f32.xlu0 %v1501_v29 }
 0x2c6   : > { %v2304_v57 = vpop.f32.mrf.mxu1  ;;  %v1397_v58 = vpop.f32.mrf.mxu0 }
 0x2c8   : > { %v2310_v59 = vpop.f32.mrf.mxu0  ;;  %v1440_v60 = vpop.f32.mrf.mxu1 }
 0x2c9   : > { %v1496_v61 = vsel %vm3204_vm10, %v1440_v60, -1000000.0 }
 0x2ca   : > { %v2315_v62 = vpop.f32.mrf.mxu1  ;;  %v1486_v63 = vpop.f32.mrf.mxu0  ;;  %v1504_v1 = vsel %vm1307_vm4, %v1496_v61, -inf }
 0x2cb   : > { %v1497_v2 = vsel %vm3204_vm10, %v1486_v63, -1000000.0  ;;  %1505 = vmax.xlane.f32.xlu1 %v1504_v1 }
 0x2cc   : > { %v1443_v3 = vpop.f32.mrf.mxu1  ;;  %v2321_v4 = vpop.f32.mrf.mxu0  ;;  %v1507_v5 = vsel %vm1307_vm4, %v1497_v2, -inf }
 0x2cd   : > { %1508 = vmax.xlane.f32.xlu0 %v1507_v5 }
 0x2ce   : > { %v2316_v6 = vpop.f32.mrf.mxu1  ;;  %v1489_v8 = vpop.f32.mrf.mxu0 }
 0x2d0   : > { %v2322_v9 = vpop.f32.mrf.mxu0 }
 0x2dc   : > { %873 = vrot.lane.b32.xlu1 %v871_v10, %s2813_s27  ;;  %s1977_s27 = sshll.u32 %s3272_s26, 4  ;;  %s3339_s27 = int_to_ptr.vmem [resolvable:$true] %s1977_s27 }
 0x2dd   : > { %s2673_s20 = scalar_lea.vmem %s3339_s27, 512  ;;  %p2680_p0 = scmp.lt.s32.totalorder %s3339_s27, %s2678_s23 }
 0x2de   : > { %p2674_p12 = scmp.ne.s32.totalorder %s3339_s27, %s2673_s20 }
 0x2e0   : > { %877 = vrot.lane.b32.xlu1 %v871_v10, %s2812_s22  ;;  %s2241_s22 = sshll.u32 %s2791_s16, 9  ;;  %p2675_p3 = pnand %p2674_p12, %p3489_p11 }
 0x2e1   : > { %s3337_s8 = scalar_lea.hbm %s3488_s28, %s2241_s22 }
 0x2e2   : > { %p2676_p9 = pneg %p2675_p3 }
 0x2e3   : > { %875 = vrot.lane.b32.xlu0 %v871_v10, %s2814_s15 }
 0x34c   : > { %v1500_v11 = vpop.xlane.xlu1 %1499 }
 0x34d   : > { %v1510_v12 = vsub.f32 %v1494_v51, %v1500_v11 }
 0x34e   : > { %v1503_v13 = vpop.xlane.xlu0 %1502 }
 0x34f   : > { %v1514_v14 = vmul.f32 1.442695, %v1510_v12  ;;  %v1511_v15 = vsub.f32 %v1495_v25, %v1503_v13 }
 0x351   : > { %2493 = vpow2.f32 %v1514_v14  ;;  %v1516_v16 = vmul.f32 1.442695, %v1511_v15 }
 0x353   : > { %2495 = vpow2.f32 %v1516_v16 }
 0x354   : > { %v1506_v17 = vpop.xlane.xlu1 %1505 }
 0x355   : > { %v1512_v18 = vsub.f32 %v1496_v61, %v1506_v17 }
 0x356   : > { %v1509_v19 = vpop.xlane.xlu0 %1508 }
 0x357   : > { %v1518_v20 = vmul.f32 1.442695, %v1512_v18  ;;  %v1513_v21 = vsub.f32 %v1497_v2, %v1509_v19 }
 0x358   : > { %v874_v22 = vpop.permute.xlu1 %873 }
 0x359   : > { %2497 = vpow2.f32 %v1518_v20  ;;  %v1520_v23 = vmul.f32 1.442695, %v1513_v21  ;;  %v919_v30 = vrot.slane %v874_v22, %v3129_v31 }
 0x35a   : > { %v876_v24 = vpop.permute.xlu0 %875 }
 0x35b   : > { %2499 = vpow2.f32 %v1520_v23  ;;  %v893_v27 = vrot.slane %v876_v24, %v3129_v31 }
 0x35c   : > { %v878_v28 = vpop.permute.xlu1 %877 }
 0x35d   : > { %v894_v32 = vcombine.low %v885_v26, %v893_v27  ;;  %v895_v33 = vcombine.high %v885_v26, %v893_v27  ;;  %v927_v34 = vrot.slane %v878_v28, %v3129_v31 }
 0x35e   : > { %v3227_v36 = vpop.eup %2493 }
 0x35f   : > { %v902_v37 = vrot.slane %v894_v32, %v3133_v35  ;;  %v909_v38 = vrot.slane %v895_v33, %v3133_v35  ;;  %v928_v39 = vcombine.low %v919_v30, %v927_v34  ;;  %v929_v40 = vcombine.high %v919_v30, %v927_v34 }
 0x360   : > { %v3231_v41 = vpop.eup %2495  ;;  %v1522_v42 = vsel %vm1307_vm4, %v3227_v36, 0.0 }
 0x361   : > { %v910_v43 = vcombine.high %v902_v37, %v2811_v7  ;;  %v911_v44 = vcombine.high %v909_v38, %v2811_v7  ;;  %1523 = vadd.xlane.f32.xlu1 %v1522_v42  ;;  %v936_v45 = vrot.slane %v928_v39, %v3133_v35  ;;  %v943_v46 = vrot.slane %v929_v40, %v3133_v35 }
 0x362   : > { %v1525_v47 = vsel %vm1307_vm4, %v3231_v41, 0.0  ;;  %v950_v48 = vshrl.u32 %v902_v37, 16  ;;  %v966_v50 = vshrl.u32 %v909_v38, 16 }
 0x363   : > { %1526 = vadd.xlane.f32.xlu0 %v1525_v47  ;;  %v944_v51 = vcombine.high %v936_v45, %v2811_v7  ;;  %v945_v52 = vcombine.high %v943_v46, %v2811_v7  ;;  %v948_v53 = vpack.i.b16 %v936_v45, %v902_v37  ;;  %v951_v54 = vshrl.u32 %v936_v45, 16 }
 0x364   : > { %v958_v25 = vshrl.u32 %v910_v43, 16  ;;  %v974_v55 = vshrl.u32 %v911_v44, 16  ;;  %v964_v56 = vpack.i.b16 %v943_v46, %v909_v38  ;;  %v967_v29 = vshrl.u32 %v943_v46, 16 }
 0x365   : > { %v952_v58 = vpack.i.b16 %v951_v54, %v950_v48  ;;  %v956_v59 = vpack.i.b16 %v944_v51, %v910_v43  ;;  %v959_v60 = vshrl.u32 %v944_v51, 16  ;;  %v972_v61 = vpack.i.b16 %v945_v52, %v911_v44  ;;  %v1747_v54 = vld [vmem:[%s3486_s9] sm:$0xf] }
 0x366   : > { %v3243_v57 = vpop.eup %2497  ;;  %v968_v62 = vpack.i.b16 %v967_v29, %v966_v50  ;;  %v975_v63 = vshrl.u32 %v945_v52, 16  ;;  %v978_v1 = vcombine.low %v948_v53, %v964_v56  ;;  %v1748_v29 = vld [vmem:[%s3486_s9 + $0x4] sm:$0xf] }
 0x367   : > { %v1528_v2 = vsel %vm1307_vm4, %v3243_v57, 0.0  ;;  %v960_v4 = vpack.i.b16 %v959_v60, %v958_v25  ;;  %v986_v5 = vcombine.low %v956_v59, %v972_v61  ;;  %v1801_v60 = vsel %vm1561_vm11, %v1748_v29, 0 }
 0x368   : > { %v3247_v3 = vpop.eup %2499  ;;  %1529 = vadd.xlane.f32.xlu0 %v1528_v2  ;;  %v976_v6 = vpack.i.b16 %v975_v63, %v974_v55  ;;  %v1003_v8 = vcombine.low %v952_v58, %v968_v62  ;;  %v985_v10 = vrot.slane %v978_v1, %v3129_v31  ;;  %v1755_v58 = vsel %vm1561_vm11, %v1747_v54, 0  ;;  %v1750_v62 = vld [vmem:[%s3486_s9 + $0xc] sm:$0xf] }
 0x369   : > { %v1531_v9 = vsel %vm1307_vm4, %v3247_v3, 0.0  ;;  %v993_v11 = vrot.slane %v986_v5, %v3129_v31  ;;  %v1847_v1 = vsel %vm1561_vm11, %v1749_v49, 0  ;;  %v1893_v5 = vsel %vm1561_vm11, %v1750_v62, 0 }
 0x36a   : > { %1532 = vadd.xlane.f32.xlu1 %v1531_v9  ;;  %v1011_v12 = vcombine.low %v960_v4, %v976_v6  ;;  %v1010_v14 = vrot.slane %v1003_v8, %v3129_v31 }
 0x36b   : > { %v994_v13 = vcombine.low %v985_v10, %v993_v11 }
 0x36c   : > { %v1018_v15 = vrot.slane %v1011_v12, %v3129_v31 }
 0x36d   : > { %v1001_v16 = vrot.slane %v994_v13, %v3133_v35 }
 0x36e   : > { %v1019_v17 = vcombine.low %v1010_v14, %v1018_v15 }
 0x36f   : > { %v1002_v18 = vcombine.high %v1001_v16, %v2811_v7  ;;  %v1032_v22 = vshrl.u32 %v1001_v16, 16 }
 0x370   : > { %v1026_v19 = vrot.slane %v1019_v17, %v3133_v35 }
 0x371   : > { %v1040_v27 = vshrl.u32 %v1002_v18, 16 }
 0x372   : > { %v1027_v20 = vcombine.high %v1026_v19, %v2811_v7  ;;  %v1030_v21 = vpack.i.b16 %v1026_v19, %v1001_v16  ;;  %v1033_v23 = vshrl.u32 %v1026_v19, 16 }
 0x374   : > { %v1034_v24 = vpack.i.b16 %v1033_v23, %v1032_v22  ;;  %v1038_v26 = vpack.i.b16 %v1027_v20, %v1002_v18  ;;  %v1041_v28 = vshrl.u32 %v1027_v20, 16  ;;  %1044 = vst.msk [vmem:[#allocation3] sm:$0xf] %vm866_vm3, %v1030_v21 }
 0x376   : > { %v1042_v30 = vpack.i.b16 %v1041_v28, %v1040_v27  ;;  %1045 = vst.msk [vmem:[#allocation3 + $0x4] sm:$0xf] %vm866_vm3, %v1034_v24  ;;  %1046 = vst.msk [vmem:[#allocation3 + $0x8] sm:$0xf] %vm866_vm3, %v1038_v26 }
 0x378   : > { %1047 = vst.msk [vmem:[#allocation3 + $0xc] sm:$0xf] %vm866_vm3, %v1042_v30 }
 0x37b   : > { %v1554_v31 = vld [vmem:[#allocation3] sm:$0xf] }
 0x37c   : > { %v1563_v7 = vsel %vm1561_vm11, %v1554_v31, 0 }
 0x37d   : > { %2324 = vmatpush3.bf16.msra.mxu1 %v1563_v7  ;;  %v1555_v35 = vld [vmem:[#allocation3 + $0x4] sm:$0xf]  ;;  %v1556_v45 = vld [vmem:[#allocation3 + $0x8] sm:$0xf] }
 0x37e   : > { %v1609_v32 = vsel %vm1561_vm11, %v1555_v35, 0  ;;  %2335 = vmatprep.subr.bf16.mxu1 %v2809_v0 }
 0x37f   : > { %2330 = vmatpush3.bf16.msra.mxu0 %v1609_v32  ;;  %v1557_v48 = vld [vmem:[#allocation3 + $0xc] sm:$0xf] }
 0x380   : > { %2341 = vmatprep.subr.bf16.mxu0 %v2809_v0  ;;  %v1701_v52 = vsel %vm1561_vm11, %v1557_v48, 0 }
 0x3ea   : > { %v1524_v33 = vpop.xlane.xlu1 %1523 }
 0x3eb   : > { %2501 = vrcp.f32 %v1524_v33 }
 0x3ec   : > { %v1527_v34 = vpop.xlane.xlu0 %1526 }
 0x3ed   : > { %2503 = vrcp.f32 %v1527_v34 }
 0x3f1   : > { %v1530_v37 = vpop.xlane.xlu0 %1529 }
 0x3f2   : > { %2505 = vrcp.f32 %v1530_v37 }
 0x3f3   : > { %v1533_v38 = vpop.xlane.xlu1 %1532 }
 0x3f4   : > { %2507 = vrcp.f32 %v1533_v38 }
 0x3f8   : > { %v2502_v39 = vpop.eup %2501 }
 0x3f9   : > { %v1538_v40 = vmul.f32 %v2502_v39, %v3227_v36  ;;  %v1655_v36 = vsel %vm1561_vm11, %v1556_v45, 0 }
 0x3fa   : > { %v2504_v42 = vpop.eup %2503 }
 0x3fb   : > { %v1539_v43 = vmul.f32 %v2504_v42, %v3231_v41  ;;  %v1542_v44 = vsel %vm3204_vm10, %v1538_v40, 0.0 }
 0x3fc   : > { %1546 = vst.msk [vmem:[%s3272_s26] sm:$0xff] %vm1307_vm4, %v1542_v44  ;;  %v1550_v46 = vpack.c.bf16 %v1542_v44, %v1542_v44 }
 0x3fd   : > { %v1543_v47 = vsel %vm3204_vm10, %v1539_v43, 0.0 }
 0x3fe   : > { %2326 = vmatmul.mubr.msk.bf16.vlgmr.msra.gmra.mxu1 %vm1307_vm4, %v1550_v46  ;;  %1547 = vst.msk [vmem:[%s3272_s26 + $0x8] sm:$0xff] %vm1307_vm4, %v1543_v47  ;;  %v1551_v41 = vpack.c.bf16 %v1543_v47, %v1543_v47 }
 0x3ff   : > { %v2506_v50 = vpop.eup %2505  ;;  %2336 = vmatpush3.bf16.msra.mxu1 %v1655_v36  ;;  %2337 = vmatprep.mubr.msk.bf16.mxu1 %vm2810_vm0, %v2809_v0 }
 0x400   : > { %v1540_v51 = vmul.f32 %v2506_v50, %v3243_v57  ;;  %2332 = vmatmul.mubr.msk.bf16.vlgmr.msra.gmra.mxu0 %vm1307_vm4, %v1551_v41  ;;  %2347 = vmatprep.subr.bf16.mxu1 %v2809_v0 }
 0x401   : > { %v2508_v53 = vpop.eup %2507  ;;  %2342 = vmatpush3.bf16.msra.mxu0 %v1701_v52  ;;  %2343 = vmatprep.mubr.msk.bf16.mxu0 %vm2810_vm0, %v2809_v0 }
 0x402   : > { %v1541_v25 = vmul.f32 %v2508_v53, %v3247_v3  ;;  %v1544_v55 = vsel %vm3204_vm10, %v1540_v51, 0.0  ;;  %2353 = vmatprep.subr.bf16.mxu0 %v2809_v0 }
 0x403   : > { %1548 = vst.msk [vmem:[%s3272_s26 + $0x10] sm:$0xff] %vm1307_vm4, %v1544_v55  ;;  %v1552_v56 = vpack.c.bf16 %v1544_v55, %v1544_v55 }
 0x404   : > { %v1545_v57 = vsel %vm3204_vm10, %v1541_v25, 0.0 }
 0x405   : > { %1549 = vst.msk [vmem:[%s3272_s26 + $0x18] sm:$0xff] %vm1307_vm4, %v1545_v57  ;;  %v1553_v59 = vpack.c.bf16 %v1545_v57, %v1545_v57  ;;  %s2679_s26 = scalar_lea.vmem %s2678_s23, 1024 }
 0x406   : > { %2338 = vmatmul.mubr.msk.bf16.vlgmr.msra.gmra.mxu1 %vm1307_vm4, %v1552_v56  ;;  %p2681_p7 = scmp.lt.s32.totalorder %s2679_s26, %s2673_s20 }
 0x407   : > { %2348 = vmatpush3.bf16.msra.mxu1 %v1755_v58  ;;  %2349 = vmatprep.mubr.msk.bf16.mxu1 %vm2810_vm0, %v2809_v0 }
 0x408   : > { %2344 = vmatmul.mubr.msk.bf16.vlgmr.msra.gmra.mxu0 %vm1307_vm4, %v1553_v59  ;;  %2359 = vmatprep.subr.bf16.mxu1 %v2809_v0  ;;  %p2682_p10 = por %p2681_p7, %p2680_p0 }
 0x409   : > { %2354 = vmatpush3.bf16.msra.mxu0 %v1801_v60  ;;  %2355 = vmatprep.mubr.msk.bf16.mxu0 %vm2810_vm0, %v2809_v0 }
 0x40a   : > { %2365 = vmatprep.subr.bf16.mxu0 %v2809_v0  ;;  %p2683_p13 = pnand %p2682_p10, %p2676_p9 }
 0x4be   : > { %v1599_v61 = vpop.f32.mrf.mxu1 }
 0x4bf   : > { %v1743_v63 = vpack.c.bf16 %v1599_v61, %v1599_v61 }
 0x4c0   : > { %v2327_v2 = vpop.f32.mrf.mxu1  ;;  %v1645_v3 = vpop.f32.mrf.mxu0 }
 0x4c1   : > { %v1744_v4 = vpack.c.bf16 %v1645_v3, %v1645_v3  ;;  %2350 = vmatmul.mubr.msk.bf16.vlgmr.msra.gmra.mxu1 %vm1307_vm4, %v1743_v63 }
 0x4c2   : > { %v1602_v6 = vpop.f32.mrf.mxu1  ;;  %v2333_v8 = vpop.f32.mrf.mxu0  ;;  %2360 = vmatpush3.bf16.msra.mxu1 %v1847_v1  ;;  %2361 = vmatprep.mubr.msk.bf16.mxu1 %vm2810_vm0, %v2809_v0 }
 0x4c3   : > { %2356 = vmatmul.mubr.msk.bf16.vlgmr.msra.gmra.mxu0 %vm1307_vm4, %v1744_v4 }
 0x4c4   : > { %v2328_v9 = vpop.f32.mrf.mxu1  ;;  %v1648_v10 = vpop.f32.mrf.mxu0  ;;  %2366 = vmatpush3.bf16.msra.mxu0 %v1893_v5  ;;  %2367 = vmatprep.mubr.msk.bf16.mxu0 %vm2810_vm0, %v2809_v0 }
 0x4c6   : > { %v2334_v11 = vpop.f32.mrf.mxu0  ;;  %v1691_v12 = vpop.f32.mrf.mxu1 }
 0x4c7   : > { %v1745_v13 = vpack.c.bf16 %v1691_v12, %v1691_v12 }
 0x4c8   : > { %v2339_v14 = vpop.f32.mrf.mxu1  ;;  %v1737_v15 = vpop.f32.mrf.mxu0 }
 0x4c9   : > { %v1746_v16 = vpack.c.bf16 %v1737_v15, %v1737_v15  ;;  %2362 = vmatmul.mubr.msk.bf16.vlgmr.msra.gmra.mxu1 %vm1307_vm4, %v1745_v13 }
 0x4ca   : > { %v1694_v17 = vpop.f32.mrf.mxu1  ;;  %v2345_v18 = vpop.f32.mrf.mxu0 }
 0x4cb   : > { %2368 = vmatmul.mubr.msk.bf16.vlgmr.msra.gmra.mxu0 %vm1307_vm4, %v1746_v16 }
 0x4cc   : > { %v2340_v19 = vpop.f32.mrf.mxu1  ;;  %v1740_v20 = vpop.f32.mrf.mxu0 }
 0x4ce   : > { %v2346_v21 = vpop.f32.mrf.mxu0 }
 0x4cf   : > { %2686 = shalt.err (!%p2683_p13)
}
 0x4d0   : > { %s2687_s30 = scalar_lea.hbm %s3337_s8, 512  ;;  %s2691_s25 = scalar_lea.hbm %s3488_s28, 1024 }
 0x4d1   : > { %p2688_p5 = scmp.ne.s32.totalorder %s3337_s8, %s2687_s30  ;;  %p2692_p4 = scmp.lt.s32.totalorder %s3337_s8, %s3488_s28 }
 0x4d2   : > { %p2693_p6 = scmp.lt.s32.totalorder %s2691_s25, %s2687_s30 }
 0x4d3   : > { %p2689_p2 = pnand %p2688_p5, %p3489_p11 }
 0x4d4   : > { %p2694_p8 = por %p2693_p6, %p2692_p4 }
 0x4d5   : > { %p2690_p1 = pneg %p2689_p2 }
 0x4d7   : > { %p2695_p12 = pnand %p2694_p8, %p2690_p1 }
 0x4d9   : > { %2698 = shalt.err (!%p2695_p12)
}
 0x4da   : > { %s2818_s12 = smov 128   ;;  %s2819_s22 = smov 8  }
 0x4db   : > { %2388 = dma.vmem_to_hbm [thread:$0]  (%p3489_p11), %s3339_s27, 512, %s3337_s8, %s1949_s10, %s2818_s12, %s2818_s12, %s2819_s22  }
 0x4dc   : > { %s2210_s15 = sshll.u32 %s3050_s11, 3  ;;  %s2236_s24 = sshll.u32 %s2791_s16, 7 }
 0x4dd   : > { %s552_s27 = scalar_lea.vmem [#allocation15], %s2210_s15  ;;  %s3490_s29 = sld [smem:[#allocation34_spill]] }
 0x4de   : > { %s1963_s8 = sshll.u32 %s552_s27, 4  ;;  %s1944_s16 = scalar_lea.sflag [#allocation6], %s3050_s11  ;;  %s3375_s8 = int_to_ptr.vmem [resolvable:$true] %s1963_s8 }
 0x4df   : > { %s2699_s26 = scalar_lea.vmem %s3375_s8, 128  ;;  %s2820_s30 = smov [#allocation15]  }
 0x4e0   : > { %p2700_p3 = scmp.ne.s32.totalorder %s3375_s8, %s2699_s26  ;;  %s2703_s1 = sshll.u32 %s2820_s30, 4  ;;  %s2704_s1 = int_to_ptr.vmem [resolvable:$false] %s2703_s1 }
 0x4e1   : > { %s2705_s6 = scalar_lea.vmem %s2704_s1, 256  ;;  %p2706_p7 = scmp.lt.s32.totalorder %s3375_s8, %s2704_s1 }
 0x4e2   : > { %p2701_p9 = pnand %p2700_p3, %p3489_p11  ;;  %p2707_p10 = scmp.lt.s32.totalorder %s2705_s6, %s2699_s26 }
 0x4e3   : > { %s3373_s23 = scalar_lea.hbm %s3490_s29, %s2236_s24 }
 0x4e4   : > { %p2702_p0 = pneg %p2701_p9  ;;  %p2708_p13 = por %p2707_p10, %p2706_p7 }
 0x4e6   : > { %p2709_p5 = pnand %p2708_p13, %p2702_p0 }
 0x581   : > { %v1791_v0 = vpop.f32.mrf.mxu1 }
 0x582   : > { %v1935_v31 = vsel %vm589_vm1, %v1791_v0, 0.0 }
 0x583   : > { %v2351_v22 = vpop.f32.mrf.mxu1  ;;  %v1837_v23 = vpop.f32.mrf.mxu0 }
 0x584   : > { %v1936_v27 = vsel %vm589_vm1, %v1837_v23, 0.0 }
 0x585   : > { %v1794_v24 = vpop.f32.mrf.mxu1  ;;  %v2357_v26 = vpop.f32.mrf.mxu0  ;;  %v1937_v7 = vadd.f32 %v1936_v27, %v1935_v31 }
 0x587   : > { %v2352_v28 = vpop.f32.mrf.mxu1  ;;  %v1840_v30 = vpop.f32.mrf.mxu0 }
 0x589   : > { %v2358_v35 = vpop.f32.mrf.mxu0  ;;  %v1883_v32 = vpop.f32.mrf.mxu1 }
 0x58a   : > { %v1938_v33 = vsel %vm589_vm1, %v1883_v32, 0.0 }
 0x58b   : > { %v1939_v34 = vadd.f32 %v1938_v33, %v1937_v7  ;;  %v2363_v37 = vpop.f32.mrf.mxu1  ;;  %v1929_v38 = vpop.f32.mrf.mxu0 }
 0x58c   : > { %v1940_v39 = vsel %vm589_vm1, %v1929_v38, 0.0 }
 0x58d   : > { %v1941_v40 = vadd.f32 %v1940_v39, %v1939_v34  ;;  %v1886_v42 = vpop.f32.mrf.mxu1  ;;  %v2369_v43 = vpop.f32.mrf.mxu0 }
 0x58f   : > { %v2364_v44 = vpop.f32.mrf.mxu1  ;;  %v1932_v45 = vpop.f32.mrf.mxu0  ;;  %1942 = vst.msk [vmem:[%s552_s27] sm:$0xff] %vm589_vm1, %v1941_v40 }
 0x590   : > { %2712 = shalt.err (!%p2709_p5)
}
 0x591   : > { %s2713_s25 = scalar_lea.hbm %s3373_s23, 128  ;;  %s2717_s21 = scalar_lea.hbm %s3490_s29, 256 }
 0x592   : > { %p2714_p2 = scmp.ne.s32.totalorder %s3373_s23, %s2713_s25  ;;  %p2718_p6 = scmp.lt.s32.totalorder %s3373_s23, %s3490_s29 }
 0x593   : > { %p2719_p8 = scmp.lt.s32.totalorder %s2717_s21, %s2713_s25 }
 0x594   : > { %p2715_p1 = pnand %p2714_p2, %p3489_p11 }
 0x595   : > { %p2720_p12 = por %p2719_p8, %p2718_p6 }
 0x596   : > { %p2716_p4 = pneg %p2715_p1 }
 0x598   : > { %p2721_p3 = pnand %p2720_p12, %p2716_p4 }
 0x59a   : > { %2724 = shalt.err (!%p2721_p3)
}
 0x59b   : > { %2387 = dma.vmem_to_hbm [thread:$0]  (%p3489_p11), %s3375_s8, 128, %s3373_s23, %s1944_s16   ;;  %v2370_v46 = vpop.f32.mrf.mxu0 }
 0x59c PF: > { %s3491_s15 = sld [smem:[#allocation25_spill]]  ;;  %p3494_p0 = scmp.ge.s32.totalorder %s2799_s18, 2 }
 0x59d   : > { %s3492_s24 = sld [smem:[#allocation27_spill]] }
 0x5a2   : > { %s1992_s27 = sand.u32 1, %s3491_s15  }
 0x5a3   : > { %p3493_p9 = scmp.ne.s32.totalorder %s3492_s24, 0  ;;  %s1993_s10 = scalar_lea.sflag [#allocation6], %s1992_s27 }
 0x5a5   : > { %p2412_p7 = pnand %p3494_p0, %p3493_p9 }
 0x5a7   : > { %p2413_p10 = pneg %p2412_p7 }
 0x5a9   : > { %2770 = dma.done.wait (%p2413_p10), %s1993_s10, 128  }
 0x5aa   : > { %2772 = vsyncadd (%p2413_p10), %s1993_s10, 4294967168  ;;  %s2002_s20 = scalar_lea.sflag [#allocation17], %s1992_s27 }
 0x5ab   : > { %2774 = dma.done.wait (%p2413_p10), %s2002_s20, 512  }
 0x5ac   : > { %2776 = vsyncadd (%p2413_p10), %s2002_s20, 4294966784  ;;  %s37_s18 = sadd.s32 1, %s2799_s18   ;;  %s3495_s8 = sld [smem:[#allocation26_spill]] }
 0x5ad   : > { %p34_p13 = scmp.ge.s32.totalorder %s37_s18, 4   ;;  %s3496_s15 = sld [smem:[#allocation30_spill]] }
 0x5ae   : > { %s3497_s23 = sld [smem:[#allocation28_spill]]  ;;  %s3498_s13 = smov %s2783_s14 }
 0x5af   : > { %s3500_s16 = smov %s2795_s17 }
 0x5b0   :  { %36 = sbr.rel (!%p34_p13) target bundleno = 19 (0x13), region = 170 }
 0x5b2   : > { %s3499_s14 = smov %s3495_s8 }
 0x5b4   : > { %s3501_s17 = smov %s3497_s23 }
 0x5b5   :  { %2007 = vsyncpa [#allocation5], 1 }
 0x5b6   :  { %2009 = vsyncpa [#allocation5 + $0x1], 1 }
 0x5b7   :  { %2010 = vsyncpa [#allocation8], 1 }
 0x5b8   :  { %2012 = vsyncpa [#allocation8 + $0x1], 1 }
 0x5b9   :  { %2013 = vsyncpa [#allocation11], 1 }
 0x5ba   :  { %2015 = vsyncpa [#allocation11 + $0x1], 1 }
 0x5bb   :  { %2016 = vsyncpa [#allocation14], 1 }
 0x5bc   :  { %2017 = vsyncpa [#allocation6], 1 }
 0x5bd   :  { %2019 = vsyncpa [#allocation6 + $0x1], 1 }
 0x5be   :  { %2020 = vsyncpa [#allocation17], 1 }
 0x5bf   :  { %2022 = vsyncpa [#allocation17 + $0x1], 1 }

</bundles_post_ra>
